<compile_context>
chip_gen: v7x
topology: tpu7x:2x2x1
jax: 0.10.0
libtpu: 0.0.40
codegen_flags: <defaults>
</compile_context>

<pallas_src>
import functools

import jax
import jax.numpy as jnp
from jax.experimental import pallas as pl
from jax.experimental.pallas import tpu as pltpu


# ------------------------------ helpers ------------------------------------

def _round_up(n, m):
    return ((n + m - 1) // m) * m


def _vmem_limit_bytes():
    """Generation-aware scoped-VMEM budget (v5e/v6e: 128 MiB, v7x: 64 MiB)."""
    try:
        cap = int(pltpu.get_tpu_info().vmem_capacity_bytes)
        return max(32 << 20, min(cap - (16 << 20), 100 << 20))
    except Exception:
        return 32 << 20          # conservative fallback if the query fails


_VMEM_LIMIT = _vmem_limit_bytes()


def _pick_row_tile(rows):
    # Bigger tiles amortize per-step overhead and weight DMA; cap lower on
    # VMEM-tight generations (v7x has 64 MiB physical VMEM).
    cap = 1024 if _VMEM_LIMIT >= (96 << 20) else 512
    tile = 16
    for c in (16, 32, 64, 128, 256, 512, 1024):
        if c <= cap and rows >= c:
            tile = c
    return tile


def _pick_t_tile(t):
    tile = 16
    for c in (16, 32, 64, 128, 256, 512):
        if t >= c:
            tile = c
    return tile


# ----------------------------- Pallas kernels ------------------------------

def fused_chain_kernel(ws_w_ref, ws_b_ref,          # SMEM scalars (layer weights)
                       frames_ref, wf_ref, bf_ref,  # feature projection
                       wl_ref, bl_ref,              # FULL layer-weight stack
                       wt_ref, bt_ref,              # TDNN-lite projection
                       o_ref):                      # output (row_tile, C) bf16
    """One row-tile of: 13-layer WavLM stand-in -> weighted sum -> TDNN-lite.

    grid = (row_tiles,).  The whole (NL, D, D) bf16 weight stack sits in VMEM
    at a constant block index (fetched once for the whole kernel); the layer
    loop is unrolled in-kernel.  The hidden state is carried in bf16 (matmul
    operand dtype); the Conv1d(13->1, k=1) weighted sum accumulates in f32.
    """
    nl = wl_ref.shape[0]

    # hidden_state[0]: feature projection of the raw frames (bf16 MXU, f32 acc)
    h_f32 = jnp.tanh(
        jnp.dot(frames_ref[...].astype(jnp.bfloat16), wf_ref[...],
                preferred_element_type=jnp.float32) + bf_ref[...])
    acc = ws_w_ref[0] * h_f32 + ws_b_ref[0]          # weighted sum (f32)
    h = h_f32.astype(jnp.bfloat16)                    # carry in bf16

    # hidden_state[l+1] = tanh(h @ W_l + b_l); unrolled static loop (NL = 12)
    for l in range(nl):
        h_f32 = jnp.tanh(
            jnp.dot(h, wl_ref[l], preferred_element_type=jnp.float32)
            + bl_ref[l])
        acc = acc + ws_w_ref[l + 1] * h_f32
        h = h_f32.astype(jnp.bfloat16)

    # TDNN-lite projection of the layer-weighted features, relu, bf16 out
    y = jnp.dot(acc.astype(jnp.bfloat16), wt_ref[...],
                preferred_element_type=jnp.float32) + bt_ref[...]
    o_ref[...] = jnp.maximum(y, 0.0).astype(o_ref.dtype)


def asp_emb_kernel(h_ref, w1_ref, b1_ref, w2_ref, b2_ref,
                   wem_ref, wes_ref, be_ref, o_ref,
                   m_scr, l_scr, sh_scr, sh2_scr, *, t_valid):
    """Attentive statistics pooling + final embedding linear (T-tiled).

    grid = (B, T_tiles).  Online-softmax running state (max, denom, attn-
    weighted sum, attn-weighted sum-of-squares) lives in VMEM scratch; the
    embedding matmul runs in the last-tile epilogue.  h_ref: (1, t_tile, C)
    bf16; output o_ref: (1, 1, E) f32.
    """
    t = pl.program_id(1)
    t_tile = h_ref.shape[1]

    @pl.when(t == 0)
    def _():
        m_scr[...] = jnp.full(m_scr.shape, -jnp.inf, jnp.float32)
        l_scr[...] = jnp.zeros(l_scr.shape, jnp.float32)
        sh_scr[...] = jnp.zeros(sh_scr.shape, jnp.float32)
        sh2_scr[...] = jnp.zeros(sh2_scr.shape, jnp.float32)

    h = h_ref[0]                                                    # (t, C) bf16
    a = jnp.tanh(
        jnp.dot(h, w1_ref[...], preferred_element_type=jnp.float32)
        + b1_ref[...])                                              # (t, A) f32
    # frame score: VPU lane-reduce instead of an N=1 MXU matmul
    s = jnp.sum(a * w2_ref[...], axis=-1, keepdims=True) + b2_ref[...]  # (t, 1)
    # mask rows past the true sequence length (T padded to a tile multiple)
    row = jax.lax.broadcasted_iota(jnp.int32, s.shape, 0) + t * t_tile
    s = jnp.where(row < t_valid, s, -jnp.inf)

    m_old = m_scr[...]                                              # (1, 1)
    m_new = jnp.maximum(m_old, jnp.max(s, axis=0, keepdims=True))
    alpha = jnp.exp(m_old - m_new)
    p = jnp.exp(s - m_new)                                          # (t, 1) f32
    ph = p * h                                                      # (t, C) f32
    l_scr[...] = alpha * l_scr[...] + jnp.sum(p, axis=0, keepdims=True)
    sh_scr[...] = alpha * sh_scr[...] + jnp.sum(ph, axis=0, keepdims=True)
    sh2_scr[...] = alpha * sh2_scr[...] + jnp.sum(ph * h, axis=0, keepdims=True)
    m_scr[...] = m_new

    @pl.when(t == pl.num_programs(1) - 1)
    def _():
        inv_l = 1.0 / l_scr[...]
        mean = sh_scr[...] * inv_l                                  # (1, C)
        sq = sh2_scr[...] * inv_l                                   # (1, C)
        # TODO(synk): speechbrain adds eps inside the variance; we clamp instead.
        std = jnp.sqrt(jnp.maximum(sq - mean * mean, 1e-8))         # (1, C)
        emb = (jnp.dot(mean.astype(jnp.bfloat16), wem_ref[...],
                       preferred_element_type=jnp.float32)
               + jnp.dot(std.astype(jnp.bfloat16), wes_ref[...],
                         preferred_element_type=jnp.float32)
               + be_ref[...])                                       # (1, E)
        o_ref[0] = emb


# ----------------------------- Pallas wrappers ------------------------------

def fused_wavlm_ws_tdnn(frames, wf, bf, wl, bl, ws_w, ws_b, wt, bt):
    """frames: (R, win) -> (R, C) bf16 = relu((sum_l ws_w[l]*h_l + ws_b) @ wt + bt)."""
    R, win = frames.shape
    D = wf.shape[1]
    C = wt.shape[1]
    NL = wl.shape[0]                       # 12 stand-in transformer layers

    row_tile = _pick_row_tile(R)
    Rp = _round_up(R, row_tile)
    win_pad = _round_up(win, 128)          # lane/MXU-align the contraction dim
    if (Rp != R) or (win_pad != win):
        frames = jnp.pad(frames, ((0, Rp - R), (0, win_pad - win)))

    # bf16 matmul operands (halves weight DMA, bf16 MXU path); f32 biases.
    wf_b = wf.astype(jnp.bfloat16)
    if win_pad != win:
        wf_b = jnp.pad(wf_b, ((0, win_pad - win), (0, 0)))
    wl_b = wl.astype(jnp.bfloat16)
    wt_b = wt.astype(jnp.bfloat16)
    bf2 = bf.reshape(1, D)
    bl2 = bl.reshape(NL, 1, D)
    bt2 = bt.reshape(1, C)

    out = pl.pallas_call(
        fused_chain_kernel,
        out_shape=jax.ShapeDtypeStruct((Rp, C), jnp.bfloat16),
        grid=(Rp // row_tile,),
        in_specs=[
            pl.BlockSpec(memory_space=pltpu.MemorySpace.SMEM),        # ws_w
            pl.BlockSpec(memory_space=pltpu.MemorySpace.SMEM),        # ws_b
            pl.BlockSpec((row_tile, win_pad), lambda i: (i, 0)),      # frames
            pl.BlockSpec((win_pad, D), lambda i: (0, 0)),             # w_feat
            pl.BlockSpec((1, D), lambda i: (0, 0)),                   # b_feat
            # Full layer-weight stack, constant block index -> DMA'd once.
            pl.BlockSpec((NL, D, D), lambda i: (0, 0, 0)),            # W stack
            pl.BlockSpec((NL, 1, D), lambda i: (0, 0, 0)),            # b stack
            pl.BlockSpec((D, C), lambda i: (0, 0)),                   # w_tdnn
            pl.BlockSpec((1, C), lambda i: (0, 0)),                   # b_tdnn
        ],
        out_specs=pl.BlockSpec((row_tile, C), lambda i: (i, 0)),
        compiler_params=pltpu.CompilerParams(
            dimension_semantics=("parallel",),
            vmem_limit_bytes=_VMEM_LIMIT),
    )(ws_w, ws_b, frames, wf_b, bf2, wl_b, bl2, wt_b, bt2)
    return out[:R]


def pallas_asp_emb(h, w1, b1, w2, b2, we, be):
    """h: (B, T, C) bf16 -> (B, 1, E) f32 = Linear([mean | std] of attentive pooling)."""
    B, T, C = h.shape
    A = w1.shape[1]
    E = we.shape[1]

    t_tile = _pick_t_tile(T)
    Tp = _round_up(T, t_tile)
    if Tp != T:
        h = jnp.pad(h, ((0, 0), (0, Tp - T), (0, 0)))

    w1_b = w1.astype(jnp.bfloat16)
    wem = we[:C].astype(jnp.bfloat16)      # mean branch of the embedding weight
    wes = we[C:].astype(jnp.bfloat16)      # std branch

    kernel = functools.partial(asp_emb_kernel, t_valid=T)
    return pl.pallas_call(
        kernel,
        out_shape=jax.ShapeDtypeStruct((B, 1, E), jnp.float32),
        grid=(B, Tp // t_tile),
        in_specs=[
            pl.BlockSpec((1, t_tile, C), lambda b, t: (b, t, 0)),     # h tile
            pl.BlockSpec((C, A), lambda b, t: (0, 0)),                # w_att1
            pl.BlockSpec((1, A), lambda b, t: (0, 0)),                # b_att1
            pl.BlockSpec((1, A), lambda b, t: (0, 0)),                # w_att2
            pl.BlockSpec((1, 1), lambda b, t: (0, 0)),                # b_att2
            pl.BlockSpec((C, E), lambda b, t: (0, 0)),                # we[:C]
            pl.BlockSpec((C, E), lambda b, t: (0, 0)),                # we[C:]
            pl.BlockSpec((1, E), lambda b, t: (0, 0)),                # b_emb
        ],
        out_specs=pl.BlockSpec((1, 1, E), lambda b, t: (b, 0, 0)),
        scratch_shapes=[
            pltpu.VMEM((1, 1), jnp.float32),   # running max
            pltpu.VMEM((1, 1), jnp.float32),   # running denom
            pltpu.VMEM((1, C), jnp.float32),   # running attn-weighted sum
            pltpu.VMEM((1, C), jnp.float32),   # running attn-weighted sum of squares
        ],
        compiler_params=pltpu.CompilerParams(
            dimension_semantics=("parallel", "arbitrary"),
            vmem_limit_bytes=_VMEM_LIMIT),
    )(h, w1_b, b1.reshape(1, A), w2.reshape(1, A), b2.reshape(1, 1),
      wem, wes, be.reshape(1, E))


# --------------------------- model (glue in JAX) ----------------------------

def init_params(key, *, win, D, L, C, A, E):
    keys = jax.random.split(key, 16)

    def nrm(k, shape, scale):
        return jax.random.normal(k, shape, dtype=jnp.float32) * scale

    params = {}
    # WavLM stand-in (fixed during training in the original module)
    params["w_feat"] = nrm(keys[0], (win, D), 1.0 / float(win) ** 0.5)
    params["b_feat"] = jnp.zeros((D,), jnp.float32)
    params["wl"] = nrm(keys[1], (L - 1, D, D), 1.0 / float(D) ** 0.5)
    params["bl"] = jnp.zeros((L - 1, D), jnp.float32)
    # weighted_sum = Conv1d(in=13, out=1, k=1): weight (1,13,1)->(13,), bias (1,)
    params["ws_w"] = nrm(keys[2], (L,), 1.0 / float(L) ** 0.5)
    params["ws_b"] = nrm(keys[3], (1,), 0.1)
    # ECAPA-lite
    params["w_tdnn"] = nrm(keys[4], (D, C), 1.0 / float(D) ** 0.5)
    params["b_tdnn"] = jnp.zeros((C,), jnp.float32)
    params["w_att1"] = nrm(keys[5], (C, A), 1.0 / float(C) ** 0.5)
    params["b_att1"] = jnp.zeros((A,), jnp.float32)
    params["w_att2"] = nrm(keys[6], (A, 1), 1.0 / float(A) ** 0.5)
    params["b_att2"] = jnp.zeros((1,), jnp.float32)
    params["w_emb"] = nrm(keys[7], (2 * C, E), 1.0 / float(2 * C) ** 0.5)
    params["b_emb"] = jnp.zeros((E,), jnp.float32)
    return params


@functools.partial(jax.jit, static_argnames=("win",))
def _forward_impl(params, x, win):
    B, S = x.shape
    T = S // win
    frames = x[:, : T * win].reshape(B * T, win)

    # --- fused: WavLM stand-in chain -> weighted layer sum -> TDNN-lite ---
    t = fused_wavlm_ws_tdnn(
        frames,
        params["w_feat"], params["b_feat"],
        params["wl"], params["bl"],
        params["ws_w"], params["ws_b"],
        params["w_tdnn"], params["b_tdnn"],
    )                                                    # (B*T, C) bf16
    C = params["w_tdnn"].shape[1]
    t = t.reshape(B, T, C)

    # --- attentive statistics pooling + final embedding (fused, T-tiled) ---
    emb = pallas_asp_emb(t, params["w_att1"], params["b_att1"],
                         params["w_att2"], params["b_att2"],
                         params["w_emb"], params["b_emb"])  # (B, 1, E)
    return emb


def wavlm_ecapa_weighted_forward(params, x, win):
    # torch: if len(x.shape) != 2: x = x.squeeze(0)
    if x.ndim != 2:
        x = jnp.squeeze(x, axis=0)
    return _forward_impl(params, x, win)


# ---------------------------------- main ------------------------------------

if __name__ == "__main__":
    key = jax.random.PRNGKey(0)
    k_in, k_p = jax.random.split(key)

    # Small stand-in shapes (real module: D=768, L=13, C=512, A=128, E=192)
    B, S = 2, 512
    win, D, L = 32, 32, 13
    C, A, E = 48, 16, 24

    params = init_params(k_p, win=win, D=D, L=L, C=C, A=A, E=E)
    x = jax.random.normal(k_in, (B, S), dtype=jnp.float32)   # raw waveform

    emb = wavlm_ecapa_weighted_forward(params, x, win)
    emb = jax.block_until_ready(emb)

    assert emb.shape == (B, 1, E), emb.shape
    assert bool(jnp.all(jnp.isfinite(emb)))
    print("KERNEL_OK")
</pallas_src>

<mosaic_0001>
module attributes {stable_mosaic.version = 11 : i64} {
  func.func @fused_chain_kernel(%arg0: i32, %arg1: memref<13xf32, #tpu.memory_space<smem>>, %arg2: memref<1xf32, #tpu.memory_space<smem>>, %arg3: memref<32x128xf32, #tpu.memory_space<vmem>>, %arg4: memref<128x32xbf16, #tpu.memory_space<vmem>>, %arg5: memref<1x32xf32, #tpu.memory_space<vmem>>, %arg6: memref<12x32x32xbf16, #tpu.memory_space<vmem>>, %arg7: memref<12x1x32xf32, #tpu.memory_space<vmem>>, %arg8: memref<32x48xbf16, #tpu.memory_space<vmem>>, %arg9: memref<1x48xf32, #tpu.memory_space<vmem>>, %arg10: memref<32x48xbf16, #tpu.memory_space<vmem>>) attributes {dimension_semantics = [#tpu.dimension_semantics<parallel>], iteration_bounds = array<i64: 1>, scalar_prefetch = 0 : i64, scratch_operands = 0 : i64, tpu.core_type = #tpu.core_type<tc>, window_params = [{transform_indices = @transform_0, window_bounds = array<i64: 13>}, {transform_indices = @transform_1, window_bounds = array<i64: 1>}, {transform_indices = @transform_2, window_bounds = array<i64: 32, 128>}, {pipeline_mode = #tpu.pipeline_mode<synchronous>, transform_indices = @transform_3, window_bounds = array<i64: 128, 32>}, {pipeline_mode = #tpu.pipeline_mode<synchronous>, transform_indices = @transform_4, window_bounds = array<i64: 1, 32>}, {pipeline_mode = #tpu.pipeline_mode<synchronous>, transform_indices = @transform_5, window_bounds = array<i64: 12, 32, 32>}, {pipeline_mode = #tpu.pipeline_mode<synchronous>, transform_indices = @transform_6, window_bounds = array<i64: 12, 1, 32>}, {pipeline_mode = #tpu.pipeline_mode<synchronous>, transform_indices = @transform_7, window_bounds = array<i64: 32, 48>}, {pipeline_mode = #tpu.pipeline_mode<synchronous>, transform_indices = @transform_8, window_bounds = array<i64: 1, 48>}, {transform_indices = @transform_9, window_bounds = array<i64: 32, 48>}]} {
    %c0 = arith.constant 0 : index
    %c0_0 = arith.constant 0 : index
    %0 = vector.load %arg3[%c0, %c0_0] : memref<32x128xf32, #tpu.memory_space<vmem>>, vector<32x128xf32>
    %1 = arith.truncf %0 : vector<32x128xf32> to vector<32x128xbf16>
    %c0_1 = arith.constant 0 : index
    %c0_2 = arith.constant 0 : index
    %2 = vector.load %arg4[%c0_1, %c0_2] : memref<128x32xbf16, #tpu.memory_space<vmem>>, vector<128x32xbf16>
    %cst = arith.constant dense<0.000000e+00> : vector<32x32xf32>
    %3 = tpu.matmul %1, %2, %cst {dimension_numbers = #tpu.dot_dimension_numbers<[1], [0], [0], [1], [0, 0, 1, 1], [], []>} : vector<32x128xbf16>, vector<128x32xbf16>, vector<32x32xf32> -> vector<32x32xf32>
    %c0_3 = arith.constant 0 : index
    %c0_4 = arith.constant 0 : index
    %4 = vector.load %arg5[%c0_3, %c0_4] : memref<1x32xf32, #tpu.memory_space<vmem>>, vector<1x32xf32>
    %5 = vector.broadcast %4 : vector<1x32xf32> to vector<32x32xf32>
    %6 = arith.addf %3, %5 : vector<32x32xf32>
    %7 = math.tanh %6 : vector<32x32xf32>
    %c0_5 = arith.constant 0 : index
    %8 = memref.load %arg1[%c0_5] : memref<13xf32, #tpu.memory_space<smem>>
    %9 = vector.broadcast %8 : f32 to vector<32x32xf32>
    %10 = arith.mulf %9, %7 : vector<32x32xf32>
    %c0_6 = arith.constant 0 : index
    %11 = memref.load %arg2[%c0_6] : memref<1xf32, #tpu.memory_space<smem>>
    %12 = vector.broadcast %11 : f32 to vector<32x32xf32>
    %13 = arith.addf %10, %12 : vector<32x32xf32>
    %14 = arith.truncf %7 : vector<32x32xf32> to vector<32x32xbf16>
    %c0_7 = arith.constant 0 : index
    %c0_8 = arith.constant 0 : index
    %c0_9 = arith.constant 0 : index
    %15 = vector.load %arg6[%c0_7, %c0_8, %c0_9] : memref<12x32x32xbf16, #tpu.memory_space<vmem>>, vector<1x32x32xbf16>
    %16 = vector.shape_cast %15 : vector<1x32x32xbf16> to vector<32x32xbf16>
    %cst_10 = arith.constant dense<0.000000e+00> : vector<32x32xf32>
    %17 = tpu.matmul %14, %16, %cst_10 {dimension_numbers = #tpu.dot_dimension_numbers<[1], [0], [0], [1], [0, 0, 1, 1], [], []>} : vector<32x32xbf16>, vector<32x32xbf16>, vector<32x32xf32> -> vector<32x32xf32>
    %c0_11 = arith.constant 0 : index
    %c0_12 = arith.constant 0 : index
    %c0_13 = arith.constant 0 : index
    %18 = vector.load %arg7[%c0_11, %c0_12, %c0_13] : memref<12x1x32xf32, #tpu.memory_space<vmem>>, vector<1x1x32xf32>
    %19 = vector.shape_cast %18 : vector<1x1x32xf32> to vector<1x32xf32>
    %20 = vector.broadcast %19 : vector<1x32xf32> to vector<32x32xf32>
    %21 = arith.addf %17, %20 : vector<32x32xf32>
    %22 = math.tanh %21 : vector<32x32xf32>
    %c1 = arith.constant 1 : index
    %23 = memref.load %arg1[%c1] : memref<13xf32, #tpu.memory_space<smem>>
    %24 = vector.broadcast %23 : f32 to vector<32x32xf32>
    %25 = arith.mulf %24, %22 : vector<32x32xf32>
    %26 = arith.addf %13, %25 : vector<32x32xf32>
    %27 = arith.truncf %22 : vector<32x32xf32> to vector<32x32xbf16>
    %c1_14 = arith.constant 1 : index
    %c0_15 = arith.constant 0 : index
    %c0_16 = arith.constant 0 : index
    %28 = vector.load %arg6[%c1_14, %c0_15, %c0_16] : memref<12x32x32xbf16, #tpu.memory_space<vmem>>, vector<1x32x32xbf16>
    %29 = vector.shape_cast %28 : vector<1x32x32xbf16> to vector<32x32xbf16>
    %cst_17 = arith.constant dense<0.000000e+00> : vector<32x32xf32>
    %30 = tpu.matmul %27, %29, %cst_17 {dimension_numbers = #tpu.dot_dimension_numbers<[1], [0], [0], [1], [0, 0, 1, 1], [], []>} : vector<32x32xbf16>, vector<32x32xbf16>, vector<32x32xf32> -> vector<32x32xf32>
    %c1_18 = arith.constant 1 : index
    %c0_19 = arith.constant 0 : index
    %c0_20 = arith.constant 0 : index
    %31 = vector.load %arg7[%c1_18, %c0_19, %c0_20] : memref<12x1x32xf32, #tpu.memory_space<vmem>>, vector<1x1x32xf32>
    %32 = vector.shape_cast %31 : vector<1x1x32xf32> to vector<1x32xf32>
    %33 = vector.broadcast %32 : vector<1x32xf32> to vector<32x32xf32>
    %34 = arith.addf %30, %33 : vector<32x32xf32>
    %35 = math.tanh %34 : vector<32x32xf32>
    %c2 = arith.constant 2 : index
    %36 = memref.load %arg1[%c2] : memref<13xf32, #tpu.memory_space<smem>>
    %37 = vector.broadcast %36 : f32 to vector<32x32xf32>
    %38 = arith.mulf %37, %35 : vector<32x32xf32>
    %39 = arith.addf %26, %38 : vector<32x32xf32>
    %40 = arith.truncf %35 : vector<32x32xf32> to vector<32x32xbf16>
    %c2_21 = arith.constant 2 : index
    %c0_22 = arith.constant 0 : index
    %c0_23 = arith.constant 0 : index
    %41 = vector.load %arg6[%c2_21, %c0_22, %c0_23] : memref<12x32x32xbf16, #tpu.memory_space<vmem>>, vector<1x32x32xbf16>
    %42 = vector.shape_cast %41 : vector<1x32x32xbf16> to vector<32x32xbf16>
    %cst_24 = arith.constant dense<0.000000e+00> : vector<32x32xf32>
    %43 = tpu.matmul %40, %42, %cst_24 {dimension_numbers = #tpu.dot_dimension_numbers<[1], [0], [0], [1], [0, 0, 1, 1], [], []>} : vector<32x32xbf16>, vector<32x32xbf16>, vector<32x32xf32> -> vector<32x32xf32>
    %c2_25 = arith.constant 2 : index
    %c0_26 = arith.constant 0 : index
    %c0_27 = arith.constant 0 : index
    %44 = vector.load %arg7[%c2_25, %c0_26, %c0_27] : memref<12x1x32xf32, #tpu.memory_space<vmem>>, vector<1x1x32xf32>
    %45 = vector.shape_cast %44 : vector<1x1x32xf32> to vector<1x32xf32>
    %46 = vector.broadcast %45 : vector<1x32xf32> to vector<32x32xf32>
    %47 = arith.addf %43, %46 : vector<32x32xf32>
    %48 = math.tanh %47 : vector<32x32xf32>
    %c3 = arith.constant 3 : index
    %49 = memref.load %arg1[%c3] : memref<13xf32, #tpu.memory_space<smem>>
    %50 = vector.broadcast %49 : f32 to vector<32x32xf32>
    %51 = arith.mulf %50, %48 : vector<32x32xf32>
    %52 = arith.addf %39, %51 : vector<32x32xf32>
    %53 = arith.truncf %48 : vector<32x32xf32> to vector<32x32xbf16>
    %c3_28 = arith.constant 3 : index
    %c0_29 = arith.constant 0 : index
    %c0_30 = arith.constant 0 : index
    %54 = vector.load %arg6[%c3_28, %c0_29, %c0_30] : memref<12x32x32xbf16, #tpu.memory_space<vmem>>, vector<1x32x32xbf16>
    %55 = vector.shape_cast %54 : vector<1x32x32xbf16> to vector<32x32xbf16>
    %cst_31 = arith.constant dense<0.000000e+00> : vector<32x32xf32>
    %56 = tpu.matmul %53, %55, %cst_31 {dimension_numbers = #tpu.dot_dimension_numbers<[1], [0], [0], [1], [0, 0, 1, 1], [], []>} : vector<32x32xbf16>, vector<32x32xbf16>, vector<32x32xf32> -> vector<32x32xf32>
    %c3_32 = arith.constant 3 : index
    %c0_33 = arith.constant 0 : index
    %c0_34 = arith.constant 0 : index
    %57 = vector.load %arg7[%c3_32, %c0_33, %c0_34] : memref<12x1x32xf32, #tpu.memory_space<vmem>>, vector<1x1x32xf32>
    %58 = vector.shape_cast %57 : vector<1x1x32xf32> to vector<1x32xf32>
    %59 = vector.broadcast %58 : vector<1x32xf32> to vector<32x32xf32>
    %60 = arith.addf %56, %59 : vector<32x32xf32>
    %61 = math.tanh %60 : vector<32x32xf32>
    %c4 = arith.constant 4 : index
    %62 = memref.load %arg1[%c4] : memref<13xf32, #tpu.memory_space<smem>>
    %63 = vector.broadcast %62 : f32 to vector<32x32xf32>
    %64 = arith.mulf %63, %61 : vector<32x32xf32>
    %65 = arith.addf %52, %64 : vector<32x32xf32>
    %66 = arith.truncf %61 : vector<32x32xf32> to vector<32x32xbf16>
    %c4_35 = arith.constant 4 : index
    %c0_36 = arith.constant 0 : index
    %c0_37 = arith.constant 0 : index
    %67 = vector.load %arg6[%c4_35, %c0_36, %c0_37] : memref<12x32x32xbf16, #tpu.memory_space<vmem>>, vector<1x32x32xbf16>
    %68 = vector.shape_cast %67 : vector<1x32x32xbf16> to vector<32x32xbf16>
    %cst_38 = arith.constant dense<0.000000e+00> : vector<32x32xf32>
    %69 = tpu.matmul %66, %68, %cst_38 {dimension_numbers = #tpu.dot_dimension_numbers<[1], [0], [0], [1], [0, 0, 1, 1], [], []>} : vector<32x32xbf16>, vector<32x32xbf16>, vector<32x32xf32> -> vector<32x32xf32>
    %c4_39 = arith.constant 4 : index
    %c0_40 = arith.constant 0 : index
    %c0_41 = arith.constant 0 : index
    %70 = vector.load %arg7[%c4_39, %c0_40, %c0_41] : memref<12x1x32xf32, #tpu.memory_space<vmem>>, vector<1x1x32xf32>
    %71 = vector.shape_cast %70 : vector<1x1x32xf32> to vector<1x32xf32>
    %72 = vector.broadcast %71 : vector<1x32xf32> to vector<32x32xf32>
    %73 = arith.addf %69, %72 : vector<32x32xf32>
    %74 = math.tanh %73 : vector<32x32xf32>
    %c5 = arith.constant 5 : index
    %75 = memref.load %arg1[%c5] : memref<13xf32, #tpu.memory_space<smem>>
    %76 = vector.broadcast %75 : f32 to vector<32x32xf32>
    %77 = arith.mulf %76, %74 : vector<32x32xf32>
    %78 = arith.addf %65, %77 : vector<32x32xf32>
    %79 = arith.truncf %74 : vector<32x32xf32> to vector<32x32xbf16>
    %c5_42 = arith.constant 5 : index
    %c0_43 = arith.constant 0 : index
    %c0_44 = arith.constant 0 : index
    %80 = vector.load %arg6[%c5_42, %c0_43, %c0_44] : memref<12x32x32xbf16, #tpu.memory_space<vmem>>, vector<1x32x32xbf16>
    %81 = vector.shape_cast %80 : vector<1x32x32xbf16> to vector<32x32xbf16>
    %cst_45 = arith.constant dense<0.000000e+00> : vector<32x32xf32>
    %82 = tpu.matmul %79, %81, %cst_45 {dimension_numbers = #tpu.dot_dimension_numbers<[1], [0], [0], [1], [0, 0, 1, 1], [], []>} : vector<32x32xbf16>, vector<32x32xbf16>, vector<32x32xf32> -> vector<32x32xf32>
    %c5_46 = arith.constant 5 : index
    %c0_47 = arith.constant 0 : index
    %c0_48 = arith.constant 0 : index
    %83 = vector.load %arg7[%c5_46, %c0_47, %c0_48] : memref<12x1x32xf32, #tpu.memory_space<vmem>>, vector<1x1x32xf32>
    %84 = vector.shape_cast %83 : vector<1x1x32xf32> to vector<1x32xf32>
    %85 = vector.broadcast %84 : vector<1x32xf32> to vector<32x32xf32>
    %86 = arith.addf %82, %85 : vector<32x32xf32>
    %87 = math.tanh %86 : vector<32x32xf32>
    %c6 = arith.constant 6 : index
    %88 = memref.load %arg1[%c6] : memref<13xf32, #tpu.memory_space<smem>>
    %89 = vector.broadcast %88 : f32 to vector<32x32xf32>
    %90 = arith.mulf %89, %87 : vector<32x32xf32>
    %91 = arith.addf %78, %90 : vector<32x32xf32>
    %92 = arith.truncf %87 : vector<32x32xf32> to vector<32x32xbf16>
    %c6_49 = arith.constant 6 : index
    %c0_50 = arith.constant 0 : index
    %c0_51 = arith.constant 0 : index
    %93 = vector.load %arg6[%c6_49, %c0_50, %c0_51] : memref<12x32x32xbf16, #tpu.memory_space<vmem>>, vector<1x32x32xbf16>
    %94 = vector.shape_cast %93 : vector<1x32x32xbf16> to vector<32x32xbf16>
    %cst_52 = arith.constant dense<0.000000e+00> : vector<32x32xf32>
    %95 = tpu.matmul %92, %94, %cst_52 {dimension_numbers = #tpu.dot_dimension_numbers<[1], [0], [0], [1], [0, 0, 1, 1], [], []>} : vector<32x32xbf16>, vector<32x32xbf16>, vector<32x32xf32> -> vector<32x32xf32>
    %c6_53 = arith.constant 6 : index
    %c0_54 = arith.constant 0 : index
    %c0_55 = arith.constant 0 : index
    %96 = vector.load %arg7[%c6_53, %c0_54, %c0_55] : memref<12x1x32xf32, #tpu.memory_space<vmem>>, vector<1x1x32xf32>
    %97 = vector.shape_cast %96 : vector<1x1x32xf32> to vector<1x32xf32>
    %98 = vector.broadcast %97 : vector<1x32xf32> to vector<32x32xf32>
    %99 = arith.addf %95, %98 : vector<32x32xf32>
    %100 = math.tanh %99 : vector<32x32xf32>
    %c7 = arith.constant 7 : index
    %101 = memref.load %arg1[%c7] : memref<13xf32, #tpu.memory_space<smem>>
    %102 = vector.broadcast %101 : f32 to vector<32x32xf32>
    %103 = arith.mulf %102, %100 : vector<32x32xf32>
    %104 = arith.addf %91, %103 : vector<32x32xf32>
    %105 = arith.truncf %100 : vector<32x32xf32> to vector<32x32xbf16>
    %c7_56 = arith.constant 7 : index
    %c0_57 = arith.constant 0 : index
    %c0_58 = arith.constant 0 : index
    %106 = vector.load %arg6[%c7_56, %c0_57, %c0_58] : memref<12x32x32xbf16, #tpu.memory_space<vmem>>, vector<1x32x32xbf16>
    %107 = vector.shape_cast %106 : vector<1x32x32xbf16> to vector<32x32xbf16>
    %cst_59 = arith.constant dense<0.000000e+00> : vector<32x32xf32>
    %108 = tpu.matmul %105, %107, %cst_59 {dimension_numbers = #tpu.dot_dimension_numbers<[1], [0], [0], [1], [0, 0, 1, 1], [], []>} : vector<32x32xbf16>, vector<32x32xbf16>, vector<32x32xf32> -> vector<32x32xf32>
    %c7_60 = arith.constant 7 : index
    %c0_61 = arith.constant 0 : index
    %c0_62 = arith.constant 0 : index
    %109 = vector.load %arg7[%c7_60, %c0_61, %c0_62] : memref<12x1x32xf32, #tpu.memory_space<vmem>>, vector<1x1x32xf32>
    %110 = vector.shape_cast %109 : vector<1x1x32xf32> to vector<1x32xf32>
    %111 = vector.broadcast %110 : vector<1x32xf32> to vector<32x32xf32>
    %112 = arith.addf %108, %111 : vector<32x32xf32>
    %113 = math.tanh %112 : vector<32x32xf32>
    %c8 = arith.constant 8 : index
    %114 = memref.load %arg1[%c8] : memref<13xf32, #tpu.memory_space<smem>>
    %115 = vector.broadcast %114 : f32 to vector<32x32xf32>
    %116 = arith.mulf %115, %113 : vector<32x32xf32>
    %117 = arith.addf %104, %116 : vector<32x32xf32>
    %118 = arith.truncf %113 : vector<32x32xf32> to vector<32x32xbf16>
    %c8_63 = arith.constant 8 : index
    %c0_64 = arith.constant 0 : index
    %c0_65 = arith.constant 0 : index
    %119 = vector.load %arg6[%c8_63, %c0_64, %c0_65] : memref<12x32x32xbf16, #tpu.memory_space<vmem>>, vector<1x32x32xbf16>
    %120 = vector.shape_cast %119 : vector<1x32x32xbf16> to vector<32x32xbf16>
    %cst_66 = arith.constant dense<0.000000e+00> : vector<32x32xf32>
    %121 = tpu.matmul %118, %120, %cst_66 {dimension_numbers = #tpu.dot_dimension_numbers<[1], [0], [0], [1], [0, 0, 1, 1], [], []>} : vector<32x32xbf16>, vector<32x32xbf16>, vector<32x32xf32> -> vector<32x32xf32>
    %c8_67 = arith.constant 8 : index
    %c0_68 = arith.constant 0 : index
    %c0_69 = arith.constant 0 : index
    %122 = vector.load %arg7[%c8_67, %c0_68, %c0_69] : memref<12x1x32xf32, #tpu.memory_space<vmem>>, vector<1x1x32xf32>
    %123 = vector.shape_cast %122 : vector<1x1x32xf32> to vector<1x32xf32>
    %124 = vector.broadcast %123 : vector<1x32xf32> to vector<32x32xf32>
    %125 = arith.addf %121, %124 : vector<32x32xf32>
    %126 = math.tanh %125 : vector<32x32xf32>
    %c9 = arith.constant 9 : index
    %127 = memref.load %arg1[%c9] : memref<13xf32, #tpu.memory_space<smem>>
    %128 = vector.broadcast %127 : f32 to vector<32x32xf32>
    %129 = arith.mulf %128, %126 : vector<32x32xf32>
    %130 = arith.addf %117, %129 : vector<32x32xf32>
    %131 = arith.truncf %126 : vector<32x32xf32> to vector<32x32xbf16>
    %c9_70 = arith.constant 9 : index
    %c0_71 = arith.constant 0 : index
    %c0_72 = arith.constant 0 : index
    %132 = vector.load %arg6[%c9_70, %c0_71, %c0_72] : memref<12x32x32xbf16, #tpu.memory_space<vmem>>, vector<1x32x32xbf16>
    %133 = vector.shape_cast %132 : vector<1x32x32xbf16> to vector<32x32xbf16>
    %cst_73 = arith.constant dense<0.000000e+00> : vector<32x32xf32>
    %134 = tpu.matmul %131, %133, %cst_73 {dimension_numbers = #tpu.dot_dimension_numbers<[1], [0], [0], [1], [0, 0, 1, 1], [], []>} : vector<32x32xbf16>, vector<32x32xbf16>, vector<32x32xf32> -> vector<32x32xf32>
    %c9_74 = arith.constant 9 : index
    %c0_75 = arith.constant 0 : index
    %c0_76 = arith.constant 0 : index
    %135 = vector.load %arg7[%c9_74, %c0_75, %c0_76] : memref<12x1x32xf32, #tpu.memory_space<vmem>>, vector<1x1x32xf32>
    %136 = vector.shape_cast %135 : vector<1x1x32xf32> to vector<1x32xf32>
    %137 = vector.broadcast %136 : vector<1x32xf32> to vector<32x32xf32>
    %138 = arith.addf %134, %137 : vector<32x32xf32>
    %139 = math.tanh %138 : vector<32x32xf32>
    %c10 = arith.constant 10 : index
    %140 = memref.load %arg1[%c10] : memref<13xf32, #tpu.memory_space<smem>>
    %141 = vector.broadcast %140 : f32 to vector<32x32xf32>
    %142 = arith.mulf %141, %139 : vector<32x32xf32>
    %143 = arith.addf %130, %142 : vector<32x32xf32>
    %144 = arith.truncf %139 : vector<32x32xf32> to vector<32x32xbf16>
    %c10_77 = arith.constant 10 : index
    %c0_78 = arith.constant 0 : index
    %c0_79 = arith.constant 0 : index
    %145 = vector.load %arg6[%c10_77, %c0_78, %c0_79] : memref<12x32x32xbf16, #tpu.memory_space<vmem>>, vector<1x32x32xbf16>
    %146 = vector.shape_cast %145 : vector<1x32x32xbf16> to vector<32x32xbf16>
    %cst_80 = arith.constant dense<0.000000e+00> : vector<32x32xf32>
    %147 = tpu.matmul %144, %146, %cst_80 {dimension_numbers = #tpu.dot_dimension_numbers<[1], [0], [0], [1], [0, 0, 1, 1], [], []>} : vector<32x32xbf16>, vector<32x32xbf16>, vector<32x32xf32> -> vector<32x32xf32>
    %c10_81 = arith.constant 10 : index
    %c0_82 = arith.constant 0 : index
    %c0_83 = arith.constant 0 : index
    %148 = vector.load %arg7[%c10_81, %c0_82, %c0_83] : memref<12x1x32xf32, #tpu.memory_space<vmem>>, vector<1x1x32xf32>
    %149 = vector.shape_cast %148 : vector<1x1x32xf32> to vector<1x32xf32>
    %150 = vector.broadcast %149 : vector<1x32xf32> to vector<32x32xf32>
    %151 = arith.addf %147, %150 : vector<32x32xf32>
    %152 = math.tanh %151 : vector<32x32xf32>
    %c11 = arith.constant 11 : index
    %153 = memref.load %arg1[%c11] : memref<13xf32, #tpu.memory_space<smem>>
    %154 = vector.broadcast %153 : f32 to vector<32x32xf32>
    %155 = arith.mulf %154, %152 : vector<32x32xf32>
    %156 = arith.addf %143, %155 : vector<32x32xf32>
    %157 = arith.truncf %152 : vector<32x32xf32> to vector<32x32xbf16>
    %c11_84 = arith.constant 11 : index
    %c0_85 = arith.constant 0 : index
    %c0_86 = arith.constant 0 : index
    %158 = vector.load %arg6[%c11_84, %c0_85, %c0_86] : memref<12x32x32xbf16, #tpu.memory_space<vmem>>, vector<1x32x32xbf16>
    %159 = vector.shape_cast %158 : vector<1x32x32xbf16> to vector<32x32xbf16>
    %cst_87 = arith.constant dense<0.000000e+00> : vector<32x32xf32>
    %160 = tpu.matmul %157, %159, %cst_87 {dimension_numbers = #tpu.dot_dimension_numbers<[1], [0], [0], [1], [0, 0, 1, 1], [], []>} : vector<32x32xbf16>, vector<32x32xbf16>, vector<32x32xf32> -> vector<32x32xf32>
    %c11_88 = arith.constant 11 : index
    %c0_89 = arith.constant 0 : index
    %c0_90 = arith.constant 0 : index
    %161 = vector.load %arg7[%c11_88, %c0_89, %c0_90] : memref<12x1x32xf32, #tpu.memory_space<vmem>>, vector<1x1x32xf32>
    %162 = vector.shape_cast %161 : vector<1x1x32xf32> to vector<1x32xf32>
    %163 = vector.broadcast %162 : vector<1x32xf32> to vector<32x32xf32>
    %164 = arith.addf %160, %163 : vector<32x32xf32>
    %165 = math.tanh %164 : vector<32x32xf32>
    %c12 = arith.constant 12 : index
    %166 = memref.load %arg1[%c12] : memref<13xf32, #tpu.memory_space<smem>>
    %167 = vector.broadcast %166 : f32 to vector<32x32xf32>
    %168 = arith.mulf %167, %165 : vector<32x32xf32>
    %169 = arith.addf %156, %168 : vector<32x32xf32>
    %170 = arith.truncf %169 : vector<32x32xf32> to vector<32x32xbf16>
    %c0_91 = arith.constant 0 : index
    %c0_92 = arith.constant 0 : index
    %171 = vector.load %arg8[%c0_91, %c0_92] : memref<32x48xbf16, #tpu.memory_space<vmem>>, vector<32x48xbf16>
    %cst_93 = arith.constant dense<0.000000e+00> : vector<32x48xf32>
    %172 = tpu.matmul %170, %171, %cst_93 {dimension_numbers = #tpu.dot_dimension_numbers<[1], [0], [0], [1], [0, 0, 1, 1], [], []>} : vector<32x32xbf16>, vector<32x48xbf16>, vector<32x48xf32> -> vector<32x48xf32>
    %c0_94 = arith.constant 0 : index
    %c0_95 = arith.constant 0 : index
    %173 = vector.load %arg9[%c0_94, %c0_95] : memref<1x48xf32, #tpu.memory_space<vmem>>, vector<1x48xf32>
    %174 = vector.broadcast %173 : vector<1x48xf32> to vector<32x48xf32>
    %175 = arith.addf %172, %174 : vector<32x48xf32>
    %cst_96 = arith.constant 0.000000e+00 : f32
    %176 = vector.broadcast %cst_96 : f32 to vector<32x48xf32>
    %177 = arith.maximumf %175, %176 : vector<32x48xf32>
    %178 = arith.truncf %177 : vector<32x48xf32> to vector<32x48xbf16>
    %c0_97 = arith.constant 0 : index
    %c0_98 = arith.constant 0 : index
    %179 = vector.load %arg10[%c0_97, %c0_98] : memref<32x48xbf16, #tpu.memory_space<vmem>>, vector<32x48xbf16>
    tpu.vector_store %arg10[%c0_97, %c0_98], %178 {strides = array<i32>} : memref<32x48xbf16, #tpu.memory_space<vmem>>, vector<32x48xbf16>,
    return
  }
  func.func @transform_0(%arg0: i32) -> i32 {
    %c0_i32 = arith.constant 0 : i32
    %c0_i32_0 = arith.constant 0 : i32
    return %c0_i32 : i32
  }
  func.func @transform_1(%arg0: i32) -> i32 {
    %c0_i32 = arith.constant 0 : i32
    %c0_i32_0 = arith.constant 0 : i32
    return %c0_i32 : i32
  }
  func.func @transform_2(%arg0: i32) -> (i32, i32) {
    %c0_i32 = arith.constant 0 : i32
    %c0_i32_0 = arith.constant 0 : i32
    return %arg0, %c0_i32 : i32, i32
  }
  func.func @transform_3(%arg0: i32) -> (i32, i32) {
    %c0_i32 = arith.constant 0 : i32
    %c0_i32_0 = arith.constant 0 : i32
    %c0_i32_1 = arith.constant 0 : i32
    return %c0_i32, %c0_i32_0 : i32, i32
  }
  func.func @transform_4(%arg0: i32) -> (i32, i32) {
    %c0_i32 = arith.constant 0 : i32
    %c0_i32_0 = arith.constant 0 : i32
    %c0_i32_1 = arith.constant 0 : i32
    return %c0_i32, %c0_i32_0 : i32, i32
  }
  func.func @transform_5(%arg0: i32) -> (i32, i32, i32) {
    %c0_i32 = arith.constant 0 : i32
    %c0_i32_0 = arith.constant 0 : i32
    %c0_i32_1 = arith.constant 0 : i32
    %c0_i32_2 = arith.constant 0 : i32
    return %c0_i32, %c0_i32_0, %c0_i32_1 : i32, i32, i32
  }
  func.func @transform_6(%arg0: i32) -> (i32, i32, i32) {
    %c0_i32 = arith.constant 0 : i32
    %c0_i32_0 = arith.constant 0 : i32
    %c0_i32_1 = arith.constant 0 : i32
    %c0_i32_2 = arith.constant 0 : i32
    return %c0_i32, %c0_i32_0, %c0_i32_1 : i32, i32, i32
  }
  func.func @transform_7(%arg0: i32) -> (i32, i32) {
    %c0_i32 = arith.constant 0 : i32
    %c0_i32_0 = arith.constant 0 : i32
    %c0_i32_1 = arith.constant 0 : i32
    return %c0_i32, %c0_i32_0 : i32, i32
  }
  func.func @transform_8(%arg0: i32) -> (i32, i32) {
    %c0_i32 = arith.constant 0 : i32
    %c0_i32_0 = arith.constant 0 : i32
    %c0_i32_1 = arith.constant 0 : i32
    return %c0_i32, %c0_i32_0 : i32, i32
  }
  func.func @transform_9(%arg0: i32) -> (i32, i32) {
    %c0_i32 = arith.constant 0 : i32
    %c0_i32_0 = arith.constant 0 : i32
    return %arg0, %c0_i32 : i32, i32
  }
}

module attributes {stable_mosaic.version = 11 : i64} {
  func.func @asp_emb_kernel(%arg0: i32, %arg1: i32, %arg2: memref<1x16x48xbf16, #tpu.memory_space<vmem>>, %arg3: memref<48x16xbf16, #tpu.memory_space<vmem>>, %arg4: memref<1x16xf32, #tpu.memory_space<vmem>>, %arg5: memref<1x16xf32, #tpu.memory_space<vmem>>, %arg6: memref<1x1xf32, #tpu.memory_space<vmem>>, %arg7: memref<48x24xbf16, #tpu.memory_space<vmem>>, %arg8: memref<48x24xbf16, #tpu.memory_space<vmem>>, %arg9: memref<1x24xf32, #tpu.memory_space<vmem>>, %arg10: memref<1x1x24xf32, #tpu.memory_space<vmem>>, %arg11: memref<1x1xf32, #tpu.memory_space<vmem>>, %arg12: memref<1x1xf32, #tpu.memory_space<vmem>>, %arg13: memref<1x48xf32, #tpu.memory_space<vmem>>, %arg14: memref<1x48xf32, #tpu.memory_space<vmem>>) attributes {dimension_semantics = [#tpu.dimension_semantics<parallel>, #tpu.dimension_semantics<arbitrary>], iteration_bounds = array<i64: 2, 1>, scalar_prefetch = 0 : i64, scratch_operands = 4 : i64, tpu.core_type = #tpu.core_type<tc>, window_params = [{transform_indices = @transform_0, window_bounds = array<i64: 1, 16, 48>}, {pipeline_mode = #tpu.pipeline_mode<synchronous>, transform_indices = @transform_1, window_bounds = array<i64: 48, 16>}, {pipeline_mode = #tpu.pipeline_mode<synchronous>, transform_indices = @transform_2, window_bounds = array<i64: 1, 16>}, {pipeline_mode = #tpu.pipeline_mode<synchronous>, transform_indices = @transform_3, window_bounds = array<i64: 1, 16>}, {pipeline_mode = #tpu.pipeline_mode<synchronous>, transform_indices = @transform_4, window_bounds = array<i64: 1, 1>}, {pipeline_mode = #tpu.pipeline_mode<synchronous>, transform_indices = @transform_5, window_bounds = array<i64: 48, 24>}, {pipeline_mode = #tpu.pipeline_mode<synchronous>, transform_indices = @transform_6, window_bounds = array<i64: 48, 24>}, {pipeline_mode = #tpu.pipeline_mode<synchronous>, transform_indices = @transform_7, window_bounds = array<i64: 1, 24>}, {transform_indices = @transform_8, window_bounds = array<i64: 1, 1, 24>}]} {
    %c0_i32 = arith.constant 0 : i32
    %0 = arith.cmpi eq, %arg1, %c0_i32 : i32
    %1 = arith.extui %0 : i1 to i32
    %c0_i32_0 = arith.constant 0 : i32
    %2 = arith.cmpi ne, %1, %c0_i32_0 : i32
    scf.if %2 {
      %cst_36 = arith.constant 0xFF800000 : f32
      %65 = vector.broadcast %cst_36 : f32 to vector<1x1xf32>
      %c0_37 = arith.constant 0 : index
      %c0_38 = arith.constant 0 : index
      %66 = vector.load %arg11[%c0_37, %c0_38] : memref<1x1xf32, #tpu.memory_space<vmem>>, vector<1x1xf32>
      tpu.vector_store %arg11[%c0_37, %c0_38], %65 {strides = array<i32>} : memref<1x1xf32, #tpu.memory_space<vmem>>, vector<1x1xf32>,
      %cst_39 = arith.constant 0.000000e+00 : f32
      %67 = vector.broadcast %cst_39 : f32 to vector<1x1xf32>
      %c0_40 = arith.constant 0 : index
      %c0_41 = arith.constant 0 : index
      %68 = vector.load %arg12[%c0_40, %c0_41] : memref<1x1xf32, #tpu.memory_space<vmem>>, vector<1x1xf32>
      tpu.vector_store %arg12[%c0_40, %c0_41], %67 {strides = array<i32>} : memref<1x1xf32, #tpu.memory_space<vmem>>, vector<1x1xf32>,
      %cst_42 = arith.constant 0.000000e+00 : f32
      %69 = vector.broadcast %cst_42 : f32 to vector<1x48xf32>
      %c0_43 = arith.constant 0 : index
      %c0_44 = arith.constant 0 : index
      %70 = vector.load %arg13[%c0_43, %c0_44] : memref<1x48xf32, #tpu.memory_space<vmem>>, vector<1x48xf32>
      tpu.vector_store %arg13[%c0_43, %c0_44], %69 {strides = array<i32>} : memref<1x48xf32, #tpu.memory_space<vmem>>, vector<1x48xf32>,
      %cst_45 = arith.constant 0.000000e+00 : f32
      %71 = vector.broadcast %cst_45 : f32 to vector<1x48xf32>
      %c0_46 = arith.constant 0 : index
      %c0_47 = arith.constant 0 : index
      %72 = vector.load %arg14[%c0_46, %c0_47] : memref<1x48xf32, #tpu.memory_space<vmem>>, vector<1x48xf32>
      tpu.vector_store %arg14[%c0_46, %c0_47], %71 {strides = array<i32>} : memref<1x48xf32, #tpu.memory_space<vmem>>, vector<1x48xf32>,
    } else {
    }
    %c0 = arith.constant 0 : index
    %c0_1 = arith.constant 0 : index
    %c0_2 = arith.constant 0 : index
    %3 = vector.load %arg2[%c0, %c0_1, %c0_2] : memref<1x16x48xbf16, #tpu.memory_space<vmem>>, vector<1x16x48xbf16>
    %4 = vector.shape_cast %3 : vector<1x16x48xbf16> to vector<16x48xbf16>
    %c0_3 = arith.constant 0 : index
    %c0_4 = arith.constant 0 : index
    %5 = vector.load %arg3[%c0_3, %c0_4] : memref<48x16xbf16, #tpu.memory_space<vmem>>, vector<48x16xbf16>
    %cst = arith.constant dense<0.000000e+00> : vector<16x16xf32>
    %6 = tpu.matmul %4, %5, %cst {dimension_numbers = #tpu.dot_dimension_numbers<[1], [0], [0], [1], [0, 0, 1, 1], [], []>} : vector<16x48xbf16>, vector<48x16xbf16>, vector<16x16xf32> -> vector<16x16xf32>
    %c0_5 = arith.constant 0 : index
    %c0_6 = arith.constant 0 : index
    %7 = vector.load %arg4[%c0_5, %c0_6] : memref<1x16xf32, #tpu.memory_space<vmem>>, vector<1x16xf32>
    %8 = vector.broadcast %7 : vector<1x16xf32> to vector<16x16xf32>
    %9 = arith.addf %6, %8 : vector<16x16xf32>
    %10 = math.tanh %9 : vector<16x16xf32>
    %c0_7 = arith.constant 0 : index
    %c0_8 = arith.constant 0 : index
    %11 = vector.load %arg5[%c0_7, %c0_8] : memref<1x16xf32, #tpu.memory_space<vmem>>, vector<1x16xf32>
    %12 = vector.broadcast %11 : vector<1x16xf32> to vector<16x16xf32>
    %13 = arith.mulf %10, %12 : vector<16x16xf32>
    %cst_9 = arith.constant dense<0.000000e+00> : vector<16xf32>
    %14 = vector.multi_reduction <add>, %13, %cst_9 [1] : vector<16x16xf32> to vector<16xf32>
    %15 = vector.shape_cast %14 : vector<16xf32> to vector<16x1xf32>
    %c0_10 = arith.constant 0 : index
    %c0_11 = arith.constant 0 : index
    %16 = vector.load %arg6[%c0_10, %c0_11] : memref<1x1xf32, #tpu.memory_space<vmem>>, vector<1x1xf32>
    %17 = vector.broadcast %16 : vector<1x1xf32> to vector<16x1xf32>
    %18 = arith.addf %15, %17 : vector<16x1xf32>
    %19 = tpu.iota {dimensions = array<i32: 0>} : vector<16x1xi32>
    %c16_i32 = arith.constant 16 : i32
    %20 = arith.muli %arg1, %c16_i32 : i32
    %21 = vector.broadcast %20 : i32 to vector<16x1xi32>
    %22 = arith.addi %19, %21 : vector<16x1xi32>
    %c16_i32_12 = arith.constant 16 : i32
    %23 = vector.broadcast %c16_i32_12 : i32 to vector<16x1xi32>
    %24 = arith.cmpi slt, %22, %23 : vector<16x1xi32>
    %cst_13 = arith.constant 0xFF800000 : f32
    %25 = vector.broadcast %cst_13 : f32 to vector<16x1xf32>
    %26 = arith.select %24, %18, %25 : vector<16x1xi1>, vector<16x1xf32>
    %c0_14 = arith.constant 0 : index
    %c0_15 = arith.constant 0 : index
    %27 = vector.load %arg11[%c0_14, %c0_15] : memref<1x1xf32, #tpu.memory_space<vmem>>, vector<1x1xf32>
    %cst_16 = arith.constant dense<0xFF800000> : vector<1xf32>
    %28 = vector.multi_reduction <maximumf>, %26, %cst_16 [0] : vector<16x1xf32> to vector<1xf32>
    %29 = vector.shape_cast %28 : vector<1xf32> to vector<1x1xf32>
    %30 = arith.maximumf %27, %29 : vector<1x1xf32>
    %31 = arith.subf %27, %30 : vector<1x1xf32>
    %32 = math.exp %31 : vector<1x1xf32>
    %33 = vector.broadcast %30 : vector<1x1xf32> to vector<16x1xf32>
    %34 = arith.subf %26, %33 : vector<16x1xf32>
    %35 = math.exp %34 : vector<16x1xf32>
    %36 = arith.extf %4 : vector<16x48xbf16> to vector<16x48xf32>
    %37 = vector.broadcast %35 : vector<16x1xf32> to vector<16x48xf32>
    %38 = arith.mulf %37, %36 : vector<16x48xf32>
    %c0_17 = arith.constant 0 : index
    %c0_18 = arith.constant 0 : index
    %39 = vector.load %arg12[%c0_17, %c0_18] : memref<1x1xf32, #tpu.memory_space<vmem>>, vector<1x1xf32>
    %40 = arith.mulf %32, %39 : vector<1x1xf32>
    %cst_19 = arith.constant dense<0.000000e+00> : vector<1xf32>
    %41 = vector.multi_reduction <add>, %35, %cst_19 [0] : vector<16x1xf32> to vector<1xf32>
    %42 = vector.shape_cast %41 : vector<1xf32> to vector<1x1xf32>
    %43 = arith.addf %40, %42 : vector<1x1xf32>
    %c0_20 = arith.constant 0 : index
    %c0_21 = arith.constant 0 : index
    %44 = vector.load %arg12[%c0_20, %c0_21] : memref<1x1xf32, #tpu.memory_space<vmem>>, vector<1x1xf32>
    tpu.vector_store %arg12[%c0_20, %c0_21], %43 {strides = array<i32>} : memref<1x1xf32, #tpu.memory_space<vmem>>, vector<1x1xf32>,
    %c0_22 = arith.constant 0 : index
    %c0_23 = arith.constant 0 : index
    %45 = vector.load %arg13[%c0_22, %c0_23] : memref<1x48xf32, #tpu.memory_space<vmem>>, vector<1x48xf32>
    %46 = vector.broadcast %32 : vector<1x1xf32> to vector<1x48xf32>
    %47 = arith.mulf %46, %45 : vector<1x48xf32>
    %cst_24 = arith.constant dense<0.000000e+00> : vector<48xf32>
    %48 = vector.multi_reduction <add>, %38, %cst_24 [0] : vector<16x48xf32> to vector<48xf32>
    %49 = vector.shape_cast %48 : vector<48xf32> to vector<1x48xf32>
    %50 = arith.addf %47, %49 : vector<1x48xf32>
    %c0_25 = arith.constant 0 : index
    %c0_26 = arith.constant 0 : index
    %51 = vector.load %arg13[%c0_25, %c0_26] : memref<1x48xf32, #tpu.memory_space<vmem>>, vector<1x48xf32>
    tpu.vector_store %arg13[%c0_25, %c0_26], %50 {strides = array<i32>} : memref<1x48xf32, #tpu.memory_space<vmem>>, vector<1x48xf32>,
    %c0_27 = arith.constant 0 : index
    %c0_28 = arith.constant 0 : index
    %52 = vector.load %arg14[%c0_27, %c0_28] : memref<1x48xf32, #tpu.memory_space<vmem>>, vector<1x48xf32>
    %53 = vector.broadcast %32 : vector<1x1xf32> to vector<1x48xf32>
    %54 = arith.mulf %53, %52 : vector<1x48xf32>
    %55 = arith.extf %4 : vector<16x48xbf16> to vector<16x48xf32>
    %56 = arith.mulf %38, %55 : vector<16x48xf32>
    %cst_29 = arith.constant dense<0.000000e+00> : vector<48xf32>
    %57 = vector.multi_reduction <add>, %56, %cst_29 [0] : vector<16x48xf32> to vector<48xf32>
    %58 = vector.shape_cast %57 : vector<48xf32> to vector<1x48xf32>
    %59 = arith.addf %54, %58 : vector<1x48xf32>
    %c0_30 = arith.constant 0 : index
    %c0_31 = arith.constant 0 : index
    %60 = vector.load %arg14[%c0_30, %c0_31] : memref<1x48xf32, #tpu.memory_space<vmem>>, vector<1x48xf32>
    tpu.vector_store %arg14[%c0_30, %c0_31], %59 {strides = array<i32>} : memref<1x48xf32, #tpu.memory_space<vmem>>, vector<1x48xf32>,
    %c0_32 = arith.constant 0 : index
    %c0_33 = arith.constant 0 : index
    %61 = vector.load %arg11[%c0_32, %c0_33] : memref<1x1xf32, #tpu.memory_space<vmem>>, vector<1x1xf32>
    tpu.vector_store %arg11[%c0_32, %c0_33], %30 {strides = array<i32>} : memref<1x1xf32, #tpu.memory_space<vmem>>, vector<1x1xf32>,
    %c0_i32_34 = arith.constant 0 : i32
    %62 = arith.cmpi eq, %arg1, %c0_i32_34 : i32
    %63 = arith.extui %62 : i1 to i32
    %c0_i32_35 = arith.constant 0 : i32
    %64 = arith.cmpi ne, %63, %c0_i32_35 : i32
    scf.if %64 {
      %c0_36 = arith.constant 0 : index
      %c0_37 = arith.constant 0 : index
      %65 = vector.load %arg12[%c0_36, %c0_37] : memref<1x1xf32, #tpu.memory_space<vmem>>, vector<1x1xf32>
      %cst_38 = arith.constant 1.000000e+00 : f32
      %66 = vector.broadcast %cst_38 : f32 to vector<1x1xf32>
      %67 = arith.divf %66, %65 : vector<1x1xf32>
      %c0_39 = arith.constant 0 : index
      %c0_40 = arith.constant 0 : index
      %68 = vector.load %arg13[%c0_39, %c0_40] : memref<1x48xf32, #tpu.memory_space<vmem>>, vector<1x48xf32>
      %69 = vector.broadcast %67 : vector<1x1xf32> to vector<1x48xf32>
      %70 = arith.mulf %68, %69 : vector<1x48xf32>
      %c0_41 = arith.constant 0 : index
      %c0_42 = arith.constant 0 : index
      %71 = vector.load %arg14[%c0_41, %c0_42] : memref<1x48xf32, #tpu.memory_space<vmem>>, vector<1x48xf32>
      %72 = vector.broadcast %67 : vector<1x1xf32> to vector<1x48xf32>
      %73 = arith.mulf %71, %72 : vector<1x48xf32>
      %74 = arith.mulf %70, %70 : vector<1x48xf32>
      %75 = arith.subf %73, %74 : vector<1x48xf32>
      %cst_43 = arith.constant 9.99999993E-9 : f32
      %76 = vector.broadcast %cst_43 : f32 to vector<1x48xf32>
      %77 = arith.maximumf %75, %76 : vector<1x48xf32>
      %78 = math.sqrt %77 : vector<1x48xf32>
      %79 = arith.truncf %70 : vector<1x48xf32> to vector<1x48xbf16>
      %c0_44 = arith.constant 0 : index
      %c0_45 = arith.constant 0 : index
      %80 = vector.load %arg7[%c0_44, %c0_45] : memref<48x24xbf16, #tpu.memory_space<vmem>>, vector<48x24xbf16>
      %cst_46 = arith.constant dense<0.000000e+00> : vector<1x24xf32>
      %81 = tpu.matmul %79, %80, %cst_46 {dimension_numbers = #tpu.dot_dimension_numbers<[1], [0], [0], [1], [0, 0, 1, 1], [], []>} : vector<1x48xbf16>, vector<48x24xbf16>, vector<1x24xf32> -> vector<1x24xf32>
      %82 = arith.truncf %78 : vector<1x48xf32> to vector<1x48xbf16>
      %c0_47 = arith.constant 0 : index
      %c0_48 = arith.constant 0 : index
      %83 = vector.load %arg8[%c0_47, %c0_48] : memref<48x24xbf16, #tpu.memory_space<vmem>>, vector<48x24xbf16>
      %cst_49 = arith.constant dense<0.000000e+00> : vector<1x24xf32>
      %84 = tpu.matmul %82, %83, %cst_49 {dimension_numbers = #tpu.dot_dimension_numbers<[1], [0], [0], [1], [0, 0, 1, 1], [], []>} : vector<1x48xbf16>, vector<48x24xbf16>, vector<1x24xf32> -> vector<1x24xf32>
      %85 = arith.addf %81, %84 : vector<1x24xf32>
      %c0_50 = arith.constant 0 : index
      %c0_51 = arith.constant 0 : index
      %86 = vector.load %arg9[%c0_50, %c0_51] : memref<1x24xf32, #tpu.memory_space<vmem>>, vector<1x24xf32>
      %87 = arith.addf %85, %86 : vector<1x24xf32>
      %c0_52 = arith.constant 0 : index
      %c0_53 = arith.constant 0 : index
      %c0_54 = arith.constant 0 : index
      %88 = vector.load %arg10[%c0_52, %c0_53, %c0_54] : memref<1x1x24xf32, #tpu.memory_space<vmem>>, vector<1x1x24xf32>
      %89 = vector.shape_cast %88 : vector<1x1x24xf32> to vector<1x24xf32>
      %90 = vector.shape_cast %87 : vector<1x24xf32> to vector<1x1x24xf32>
      tpu.vector_store %arg10[%c0_52, %c0_53, %c0_54], %90 {strides = array<i32>} : memref<1x1x24xf32, #tpu.memory_space<vmem>>, vector<1x1x24xf32>,
    } else {
    }
    return
  }
  func.func @transform_0(%arg0: i32, %arg1: i32) -> (i32, i32, i32) {
    %c0_i32 = arith.constant 0 : i32
    %c0_i32_0 = arith.constant 0 : i32
    return %arg0, %arg1, %c0_i32 : i32, i32, i32
  }
  func.func @transform_1(%arg0: i32, %arg1: i32) -> (i32, i32) {
    %c0_i32 = arith.constant 0 : i32
    %c0_i32_0 = arith.constant 0 : i32
    %c0_i32_1 = arith.constant 0 : i32
    return %c0_i32, %c0_i32_0 : i32, i32
  }
  func.func @transform_2(%arg0: i32, %arg1: i32) -> (i32, i32) {
    %c0_i32 = arith.constant 0 : i32
    %c0_i32_0 = arith.constant 0 : i32
    %c0_i32_1 = arith.constant 0 : i32
    return %c0_i32, %c0_i32_0 : i32, i32
  }
  func.func @transform_3(%arg0: i32, %arg1: i32) -> (i32, i32) {
    %c0_i32 = arith.constant 0 : i32
    %c0_i32_0 = arith.constant 0 : i32
    %c0_i32_1 = arith.constant 0 : i32
    return %c0_i32, %c0_i32_0 : i32, i32
  }
  func.func @transform_4(%arg0: i32, %arg1: i32) -> (i32, i32) {
    %c0_i32 = arith.constant 0 : i32
    %c0_i32_0 = arith.constant 0 : i32
    %c0_i32_1 = arith.constant 0 : i32
    return %c0_i32, %c0_i32_0 : i32, i32
  }
  func.func @transform_5(%arg0: i32, %arg1: i32) -> (i32, i32) {
    %c0_i32 = arith.constant 0 : i32
    %c0_i32_0 = arith.constant 0 : i32
    %c0_i32_1 = arith.constant 0 : i32
    return %c0_i32, %c0_i32_0 : i32, i32
  }
  func.func @transform_6(%arg0: i32, %arg1: i32) -> (i32, i32) {
    %c0_i32 = arith.constant 0 : i32
    %c0_i32_0 = arith.constant 0 : i32
    %c0_i32_1 = arith.constant 0 : i32
    return %c0_i32, %c0_i32_0 : i32, i32
  }
  func.func @transform_7(%arg0: i32, %arg1: i32) -> (i32, i32) {
    %c0_i32 = arith.constant 0 : i32
    %c0_i32_0 = arith.constant 0 : i32
    %c0_i32_1 = arith.constant 0 : i32
    return %c0_i32, %c0_i32_0 : i32, i32
  }
  func.func @transform_8(%arg0: i32, %arg1: i32) -> (i32, i32, i32) {
    %c0_i32 = arith.constant 0 : i32
    %c0_i32_0 = arith.constant 0 : i32
    %c0_i32_1 = arith.constant 0 : i32
    return %arg0, %c0_i32, %c0_i32_0 : i32, i32, i32
  }
}

</mosaic_0001>

<bundles_post_ra>
// kernel: _forward_impl.3
= control target key start
LH: loop header
LB: loop body
LE: loop exit
PB: predicated region body
PF: predicated region fallthrough
CT: control target
= control target key end

     0   :  { %s1293_s0 = inlined_call_operand.vmem [shape: bf16[2,16,48], index: 0, kind: input, shape index: {}]   ;;  %s1294_s1 = inlined_call_operand.vmem [shape: bf16[48,16], index: 1, kind: input, shape index: {}]   ;;  %s1295_s2 = inlined_call_operand.vmem [shape: f32[1,16], index: 2, kind: input, shape index: {}]   ;;  %s1296_s3 = inlined_call_operand.vmem [shape: f32[1,16], index: 3, kind: input, shape index: {}]   ;;  %s1297_s4 = inlined_call_operand.<no memory space> [shape: f32[1,1], index: 4, kind: input, shape index: {}]   ;;  %s1298_s5 = inlined_call_operand.vmem [shape: bf16[48,24], index: 5, kind: input, shape index: {}]   ;;  %s1299_s6 = inlined_call_operand.vmem [shape: bf16[48,24], index: 6, kind: input, shape index: {}]   ;;  %s1300_s7 = inlined_call_operand.vmem [shape: f32[1,24], index: 7, kind: input, shape index: {}]   ;;  %s1301_s8 = inlined_call_operand.hbm [shape: f32[2,1,24], index: 8, kind: output, shape index: {}]  }
   0x1   :  { %v13_v0 = vstv %s1297_s4 }
   0x2   :  { %14 = vst [vmem:[#allocation6] sm:$0x1] %v13_v0 }
   0x3   :  { %15 = vsyncpa [#allocation8], 0 }
   0x4   :  { %17 = vsyncpa [#allocation8 + $0x1], 0  ;;  %s1098_s29 = smov 0   ;;  %s1100_s30 = smov 0  }
   0x5   :  { %s1102_s9 = smov 0   ;;  %s1104_s10 = smov 0  }
   0x6   :  { %s1106_s11 = smov 0   ;;  %s1108_s12 = smov 0  }
   0x7 LB: > { %s810_s4 = sadd.s32 4294967295, %s1043_s12   ;;  %s811_s13 = sadd.s32 4294967294, %s1043_s12   ;;  %s1043_s12 = sphi %s1108_s12, %s23_s12   ;;  %s1039_s11 = sphi %s1106_s11, %s1308_s11   ;;  %s1035_s10 = sphi %s1104_s10, %s1307_s10   ;;  %s1031_s9 = sphi %s1102_s9, %s1306_s9   ;;  %s1027_s30 = sphi %s1100_s30, %s1305_s30   ;;  %s1023_s29 = sphi %s1098_s29, %s1304_s29  }
   0x8   : > { %s35_s14 = sadd.s32 1, %s1039_s11  ;;  %s217_s15 = sadd.s32 1, %s1031_s9 }
   0x9   : > { %p37_p0 = scmp.ge.s32.totalorder %s35_s14, 2  ;;  %p227_p1 = scmp.ne.s32.totalorder %s1031_s9, %s1027_s30 }
   0xa   : > { %p228_p2 = scmp.eq.s32.totalorder %s810_s4, 1  ;;  %p233_p3 = scmp.ne.s32.totalorder %s1027_s30, %s1023_s29 }
   0xb   : > { %s1310_s14 = smov (%p37_p0, %s35_s14), 0  ;;  %p234_p5 = scmp.eq.s32.totalorder %s811_s13, 1 }
   0xc   : > { %p1138_p4 = por %p228_p2, %p227_p1  ;;  %s214_s17 = ssub.s32 %s1039_s11, %s1310_s14 }
   0xd   : > { %p814_p6 = scmp.ge.s32.totalorder %s1043_s12, 1  ;;  %p215_p7 = scmp.eq.s32.totalorder %s214_s17, 0 }
   0xe   : > { %p1145_p8 = por %p234_p5, %p233_p3  ;;  %p286_p9 = scmp.lt.s32.totalorder %s1043_s12, 3 }
   0xf   : > { %s1151_s19 = scalar_select %p215_p7, %s1031_s9, %s217_s15  }
  0x10   : > { %p287_p10 = pnand %p814_p6, %p286_p9 }
  0x11   : > { %v940_v1 = vld [vmem:[%s1294_s1] sm:$0xff] (!%p287_p10)   ;;  %v1045_v2 = vmov (!%p287_p10), 0.0   ;;  %v941_v3 = vld [vmem:[%s1294_s1 + $0x8] sm:$0xff] (!%p287_p10)   ;;  %vm1046_vm0 = vmmov (!%p287_p10), 0   ;;  %p324_p11 = scmp.lt.s32.totalorder (!%p287_p10), %s1035_s10, 1  ;;  %v942_v4 = vld [vmem:[%s1294_s1 + $0x10] sm:$0xff] (!%p287_p10)   ;;  %v481_v31 = vlaneseq (!%p287_p10) }
  0x12   : > { %290 = sbr.rel (%p287_p10) target bundleno = 862 (0x35e), region = 52  ;;  %849 = vmatprep.subr.bf16.mxu0 (!%p287_p10), %v1045_v2  ;;  %859 = vmatprep.subr.bf16.mxu1 (!%p287_p10), %v1045_v2  ;;  %vm382_vm1 = vcmask (!%p287_p10), 392192   ;;  %v817_v6 = vld [vmem:[%s1295_s2] ss:$0 sm:$0xff] (!%p287_p10)  ;;  %vm438_vm2 = vcmask (!%p287_p10), 130048   ;;  %vm338_vm3 = vcmask (!%p287_p10), 0  }
  0x13   : > { %850 = vmatpush3.bf16.msra.mxu0 (!%p287_p10), %v940_v1  ;;  %855 = vmatprep.mubr.msk.bf16.mxu0 (!%p287_p10), %vm1046_vm0, %v1045_v2  ;;  %v823_v13 = vld [vmem:[%s1296_s3] ss:$0 sm:$0xff] (!%p287_p10)  ;;  %v1047_v20 = vmov (!%p287_p10), -inf   ;;  %340 = vst.msk [vmem:[#allocation3] sm:$0x1] (!%p287_p10), %vm338_vm3, %v1045_v2  ;;  %v1048_v21 = vmov (!%p287_p10), 0  }
  0x14   : > { %851 = vmatprep.subr.bf16.mxu0 (!%p287_p10), %v1045_v2  ;;  %865 = vmatprep.mubr.msk.bf16.mxu1 (!%p287_p10), %vm1046_vm0, %v1045_v2  ;;  %339 = vst.msk [vmem:[#allocation2] sm:$0x1] (!%p287_p10), %vm338_vm3, %v1047_v20  ;;  %vm341_vm4 = vcmask (!%p287_p10), 385024   ;;  %v824_v22 = vld [vmem:[#allocation6] ss:$0 sm:$0xff] (!%p287_p10)  ;;  %vm466_vm5 = vcmask (!%p287_p10), 7168  }
  0x15   : > { %939 = vset.pattern.permute.xlu0 (!%p287_p10), %v1048_v21  ;;  %938 = vset.pattern.permute.xlu1 (!%p287_p10), %v1048_v21  ;;  %342 = vst.msk [vmem:[#allocation4] sm:$0x1] (!%p287_p10), %vm341_vm4, %v1045_v2  ;;  %343 = vst.msk [vmem:[#allocation5] sm:$0x1] (!%p287_p10), %vm341_vm4, %v1045_v2  ;;  %v482_v34 = vshrl.u32 (!%p287_p10), %v481_v31, 7  ;;  %v944_v0 = vld [vmem:[%s1298_s5] sm:$0xff] (!%p287_p10)  }
  0x16   : > { %v945_v1 = vld [vmem:[%s1298_s5 + $0x8] sm:$0xff] (!%p287_p10)   ;;  %s321_s21 = sand.u32 (!%p287_p10), 1, %s1027_s30   ;;  %vm726_vm8 = vcmask (!%p287_p10), 188416   ;;  %s1049_s15 = smov (!%p287_p10), [#allocation7]  }
  0x17   : > { %852 = vmatpush3.bf16.msra.mxu0 (!%p287_p10), %v941_v3  ;;  %v1197_v38 = vsub.s32 (!%p287_p10), 0, %v482_v34  ;;  %s322_s25 = scalar_lea.vmem (!%p287_p10), [#allocation7], %s321_s21  ;;  %s969_s17 = sshll.u32 (!%p287_p10), %s1049_s15, 4  ;;  %s970_s17 = int_to_ptr.vmem [resolvable:$false] %s969_s17 }
  0x18   : > { %853 = vmatprep.subr.bf16.mxu0 (!%p287_p10), %v1045_v2  ;;  %s741_s26 = sshll.u32 (!%p287_p10), %s322_s25, 4  ;;  %s971_s20 = scalar_lea.vmem (!%p287_p10), %s970_s17, 32  ;;  %s1248_s26 = int_to_ptr.vmem [resolvable:$true] %s741_s26 }
  0x19   : > { %s325_s24 = scalar_select %p324_p11, %s1035_s10, 1 }
  0x1a   : > { %v506_v58 = vld [vmem:[#allocation3] sm:$0x1]  ;;  %p972_p1 = scmp.lt.s32.totalorder %s1248_s26, %s970_s17 }
  0x1b   : > { %s836_s27 = sshll.u32 %s325_s24, 3  ;;  %854 = vmatpush3.bf16.msra.mxu0 %v942_v4  ;;  %v465_v37 = vld [vmem:[#allocation2] sm:$0x1]  ;;  %v946_v4 = vld [vmem:[%s1298_s5 + $0x10] sm:$0xff]   ;;  %s833_s24 = sshll.u32 %s1035_s10, 4 }
  0x1c   : > { %s331_s13 = scalar_lea.vmem %s1293_s0, %s836_s27  ;;  %869 = vmatprep.subr.bf16.mxu0 %v1045_v2  ;;  %s1246_s4 = scalar_lea.hbm %s1301_s8, %s833_s24 }
  0x1d   : > { %v1175_v5 = vld [vmem:[%s331_s13] sm:$0xff]   ;;  %s729_s10 = scalar_lea.sflag [#allocation8], %s321_s21  ;;  %s965_s13 = scalar_lea.vmem %s1248_s26, 16 }
  0x1e   : > { %856 = vmatmul.mubr.msk.bf16.vlgmr.msra.gmra.mrb[0].mxu0 %vm382_vm1, %v1175_v5  ;;  %p966_p12 = scmp.ne.s32.totalorder %s1248_s26, %s965_s13  ;;  %p973_p2 = scmp.lt.s32.totalorder %s971_s20, %s965_s13 }
  0x1f   : > { %875 = vmatprep.mubr.msk.bf16.mxu0 %vm1046_vm0, %v1045_v2  ;;  %870 = vmatpush3.bf16.msra.mxu0 %v944_v0 }
  0x20   : > { %871 = vmatprep.subr.bf16.mxu0 %v1045_v2  ;;  %p967_p13 = pnand %p966_p12, %p1138_p4  ;;  %p974_p3 = por %p973_p2, %p972_p1 }
  0x22   : > { %p968_p0 = pneg %p967_p13 }
  0x23   : > { %872 = vmatpush3.bf16.msra.mxu0 %v945_v1 }
  0x24   : > { %873 = vmatprep.subr.bf16.mxu0 %v1045_v2  ;;  %p975_p5 = pnand %p974_p3, %p968_p0 }
  0x27   : > { %874 = vmatpush3.bf16.msra.mxu0 %v946_v4 }
  0xf1   : > { %v420_v7 = vpop.f32.mrb[0].mxu0 }
  0xf2   : > { %v421_v8 = vadd.f32 %v817_v6, %v420_v7  ;;  %v857_v9 = vpop.f32.mrb[1].mxu0  ;;  %v948_v7 = vld [vmem:[%s1299_s6 + $0x8] sm:$0xff]  }
  0xf3   : > { %v423_v10 = vpop.f32.mrb[2].mxu0  ;;  %v492_v9 = vunpack.c.l.bf16 %v1175_v5 }
  0xf4   : > { %951 = vtanh.f32 %v421_v8  ;;  %v424_v11 = vadd.f32 %v817_v6, %v423_v10  ;;  %v858_v12 = vpop.f32.mrb[3].mxu0  ;;  %v947_v6 = vld [vmem:[%s1299_s6] sm:$0xff]   ;;  %v949_v8 = vld [vmem:[%s1299_s6 + $0x10] sm:$0xff]  }
  0xf5   : > { %860 = vmatpush3.bf16.msra.mxu1 %v947_v6  ;;  %v493_v12 = vunpack.c.h.bf16 %v1175_v5 }
  0xf6   : > { %953 = vtanh.f32 %v424_v11  ;;  %861 = vmatprep.subr.bf16.mxu1 %v1045_v2 }
  0xf9   : > { %862 = vmatpush3.bf16.msra.mxu1 %v948_v7 }
  0xfa   : > { %863 = vmatprep.subr.bf16.mxu1 %v1045_v2 }
  0xfd   : > { %864 = vmatpush3.bf16.msra.mxu1 %v949_v8 }
  0xfe   : > { %v952_v14 = vpop.eup %951 }
  0xff   : > { %v436_v15 = vmul.f32 %v952_v14, %v823_v13 }
 0x100   : > { %v954_v16 = vpop.eup %953 }
 0x101   : > { %v439_v17 = vsel %vm438_vm2, %v436_v15, 0.0  ;;  %v437_v18 = vmul.f32 %v954_v16, %v823_v13 }
 0x102   : > { %440 = vadd.xlane.f32.xlu0 %v439_v17 }
 0x103   : > { %v442_v19 = vsel %vm438_vm2, %v437_v18, 0.0 }
 0x106   : > { %443 = vadd.xlane.f32.xlu0 %v442_v19 }
 0x18f   : > { %v441_v23 = vpop.xlane.xlu0 %440 }
 0x190   : > { %v452_v24 = vadd.f32 %v824_v22, %v441_v23 }
 0x192   : > { %v467_v27 = vsel %vm466_vm5, %v452_v24, -inf }
 0x193   : > { %v444_v25 = vpop.xlane.xlu0 %443 }
 0x194   : > { %v453_v26 = vadd.f32 %v824_v22, %v444_v25 }
 0x196   : > { %v468_v28 = vsel %vm466_vm5, %v453_v26, -inf }
 0x197   : > { %v469_v29 = vmax.f32 %v467_v27, %v468_v28 }
 0x199   : > { %v470_v30 = vrot.slane %v469_v29, 4 }
 0x19b   : > { %v471_v32 = vmax.f32 %v469_v29, %v470_v30  ;;  %v520_v30 = vld [vmem:[#allocation4] sm:$0x1] }
 0x19d   : > { %v472_v33 = vrot.slane %v471_v32, 2 }
 0x19f   : > { %v473_v35 = vmax.f32 %v471_v32, %v472_v33  ;;  %v543_v33 = vld [vmem:[#allocation5] sm:$0x1] }
 0x1a1   : > { %v474_v36 = vrot.slane %v473_v35, 1 }
 0x1a3   : > { %v475_v39 = vmax.f32 %v473_v35, %v474_v36 }
 0x1a5   : > { %v476_v40 = vmax.f32 %v465_v37, %v475_v39 }
 0x1a7   : > { %v477_v41 = vsub.f32 %v465_v37, %v476_v40  ;;  %v484_v42 = vrot.slane %v476_v40, %v1197_v38  ;;  %558 = vst.msk [vmem:[#allocation2] sm:$0x1] %vm338_vm3, %v476_v40 }
 0x1a9   : > { %v478_v43 = vmul.f32 1.442695, %v477_v41  ;;  %v486_v44 = vsub.f32 %v452_v24, %v484_v42  ;;  %v487_v45 = vsub.f32 %v453_v26, %v484_v42 }
 0x1ab   : > { %955 = vpow2.f32 %v478_v43  ;;  %v488_v46 = vmul.f32 1.442695, %v486_v44  ;;  %v490_v47 = vmul.f32 1.442695, %v487_v45 }
 0x1ad   : > { %957 = vpow2.f32 %v488_v46 }
 0x1ae   : > { %959 = vpow2.f32 %v490_v47 }
 0x1b5   : > { %v956_v48 = vpop.eup %955 }
 0x1b6   : > { %523 = vperm.xlu0 %939, %v956_v48   ;;  %v507_v60 = vmul.f32 %v956_v48, %v506_v58 }
 0x1b7   : > { %v958_v49 = vpop.eup %957 }
 0x1b8   : > { %v960_v50 = vpop.eup %959  ;;  %v508_v51 = vsel %vm466_vm5, %v958_v49, 0.0  ;;  %496 = vperm.xlu1 %938, %v958_v49  }
 0x1b9   : > { %v509_v52 = vsel %vm466_vm5, %v960_v50, 0.0 }
 0x1ba   : > { %v510_v53 = vadd.f32 %v509_v52, %v508_v51 }
 0x1bc   : > { %v511_v54 = vrot.slane %v510_v53, 4  ;;  %501 = vperm.xlu1 %938, %v960_v50  }
 0x1be   : > { %v512_v55 = vadd.f32 %v511_v54, %v510_v53 }
 0x1c0   : > { %v513_v56 = vrot.slane %v512_v55, 2 }
 0x1c2   : > { %v514_v57 = vadd.f32 %v513_v56, %v512_v55 }
 0x1c4   : > { %v515_v59 = vrot.slane %v514_v57, 1 }
 0x1c6   : > { %v516_v61 = vadd.f32 %v515_v59, %v514_v57 }
 0x1c8   : > { %v517_v62 = vadd.f32 %v516_v61, %v507_v60 }
 0x1ca   : > { %519 = vst.msk [vmem:[#allocation3] sm:$0x1] %vm338_vm3, %v517_v62  ;;  %v724_v62 = vld [vmem:[%s1300_s7] sm:$0x1] }
 0x1d1   : > { %v562_v63 = vld [vmem:[#allocation3] sm:$0x1] }
 0x1d2   : > { %961 = vrcp.f32 %v562_v63 }
 0x1dc   : > { %v962_v3 = vpop.eup %961 }
 0x1dd   : > { %568 = vperm.xlu1 %938, %v962_v3  }
 0x235   : > { %v524_v25 = vpop.permute.xlu0 %523 }
 0x236   : > { %v529_v27 = vrot.slane %v524_v25, %v1197_v38 }
 0x237   : > { %v497_v10 = vpop.permute.xlu1 %496 }
 0x238   : > { %v504_v11 = vmul.f32 %v497_v10, %v492_v9  ;;  %v530_v34 = vmul.f32 %v529_v27, %v520_v30  ;;  %v544_v37 = vmul.f32 %v543_v33, %v529_v27 }
 0x23a   : > { %v545_v14 = vmul.f32 %v504_v11, %v492_v9  ;;  %v531_v16 = vsel %vm382_vm1, %v504_v11, 0.0 }
 0x23b   : > { %v502_v13 = vpop.permute.xlu1 %501 }
 0x23c   : > { %v505_v15 = vmul.f32 %v502_v13, %v493_v12  ;;  %v547_v20 = vsel %vm382_vm1, %v545_v14, 0.0 }
 0x23e   : > { %v532_v17 = vsel %vm382_vm1, %v505_v15, 0.0  ;;  %v546_v18 = vmul.f32 %v505_v15, %v493_v12 }
 0x23f   : > { %v533_v19 = vadd.f32 %v532_v17, %v531_v16 }
 0x240   : > { %v548_v2 = vsel %vm382_vm1, %v546_v18, 0.0 }
 0x241   : > { %v534_v21 = vrot.slane %v533_v19, 4  ;;  %v549_v22 = vadd.f32 %v548_v2, %v547_v20 }
 0x243   : > { %v535_v23 = vadd.f32 %v534_v21, %v533_v19  ;;  %v550_v24 = vrot.slane %v549_v22, 4 }
 0x245   : > { %v536_v26 = vrot.slane %v535_v23, 2  ;;  %v551_v5 = vadd.f32 %v550_v24, %v549_v22 }
 0x247   : > { %v537_v28 = vadd.f32 %v536_v26, %v535_v23  ;;  %v552_v29 = vrot.slane %v551_v5, 2 }
 0x249   : > { %v538_v31 = vrot.slane %v537_v28, 1  ;;  %v553_v32 = vadd.f32 %v552_v29, %v551_v5 }
 0x24b   : > { %v539_v35 = vadd.f32 %v538_v31, %v537_v28  ;;  %v554_v36 = vrot.slane %v553_v32, 1 }
 0x24d   : > { %v540_v39 = vadd.f32 %v539_v35, %v530_v34  ;;  %v555_v40 = vadd.f32 %v554_v36, %v553_v32 }
 0x24f   : > { %542 = vst.msk [vmem:[#allocation4] sm:$0x1] %vm341_vm4, %v540_v39  ;;  %v556_v41 = vadd.f32 %v555_v40, %v544_v37 }
 0x251   : > { %557 = vst.msk [vmem:[#allocation5] sm:$0x1] %vm341_vm4, %v556_v41 }
 0x256   : > { %v565_v44 = vld [vmem:[#allocation4] sm:$0x1] }
 0x258   : > { %v576_v46 = vld [vmem:[#allocation5] sm:$0x1] }
 0x25c   : > { %v569_v42 = vpop.permute.xlu1 %568 }
 0x25d   : > { %v574_v43 = vrot.slane %v569_v42, %v1197_v38 }
 0x25f   : > { %v575_v45 = vmul.f32 %v574_v43, %v565_v44  ;;  %v577_v47 = vmul.f32 %v576_v46, %v574_v43 }
 0x261   : > { %v578_v48 = vmul.f32 %v575_v45, %v575_v45  ;;  %v588_v49 = vpack.c.bf16 %v575_v45, %v575_v45 }
 0x263   : > { %v579_v50 = vsub.f32 %v577_v47, %v578_v48  ;;  %876 = vmatmul.mubr.msk.bf16.vlgmr.msra.gmra.mrb[4].mxu0 %vm382_vm1, %v588_v49 }
 0x265   : > { %v580_v51 = vmax.f32 %v579_v50, 1e-08 }
 0x267   : > { %963 = vrsqrt.f32 %v580_v51  ;;  %vm583_vm6 = vcmp.eq.f32.partialorder %v580_v51, inf  ;;  %v586_v54 = vand.u32 2147483648, %v580_v51  ;;  %vm585_vm7 = vcmp.eq.f32.partialorder %v580_v51, 0.0 }
 0x271   : > { %v964_v52 = vpop.eup %963 }
 0x272   : > { %v582_v53 = vmul.f32 %v964_v52, %v580_v51 }
 0x274   : > { %v584_v55 = vsel %vm583_vm6, %v580_v51, %v582_v53 }
 0x275   : > { %v587_v38 = vsel %vm585_vm7, %v586_v54, %v584_v55 }
 0x276   : > { %v595_v56 = vpack.c.bf16 %v587_v38, %v587_v38 }
 0x278   : > { %866 = vmatmul.mubr.msk.bf16.vlgmr.msra.gmra.mrb[0].mxu1 %vm382_vm1, %v595_v56 }
 0x336   : > { %v718_v57 = vpop.f32.mrb[4].mxu0 }
 0x337   : > { %v877_v58 = vpop.f32.mrb[5].mxu0 }
 0x338   : > { %v721_v59 = vpop.f32.mrb[6].mxu0 }
 0x339   : > { %v878_v60 = vpop.f32.mrb[7].mxu0 }
 0x34b   : > { %v657_v61 = vpop.f32.mrb[0].mxu1 }
 0x34c   : > { %v719_v63 = vadd.f32 %v718_v57, %v657_v61  ;;  %v867_v0 = vpop.f32.mrb[1].mxu1 }
 0x34d   : > { %v660_v1 = vpop.f32.mrb[2].mxu1 }
 0x34e   : > { %v725_v3 = vadd.f32 %v724_v62, %v719_v63  ;;  %v868_v4 = vpop.f32.mrb[3].mxu1 }
 0x350   : > { %727 = vst.msk [vmem:[%s322_s25] sm:$0x1] %vm726_vm8, %v725_v3 }
 0x351   : > { %978 = shalt.err (!%p975_p5)
}
 0x352   : > { %s979_s21 = scalar_lea.hbm %s1246_s4, 16  ;;  %s983_s24 = scalar_lea.hbm %s1301_s8, 32 }
 0x353   : > { %p980_p6 = scmp.ne.s32.totalorder %s1246_s4, %s979_s21  ;;  %p984_p10 = scmp.lt.u32.totalorder %s1246_s4, %s1301_s8 }
 0x354   : > { %p985_p11 = scmp.lt.u32.totalorder %s983_s24, %s979_s21  ;;  %p987_p13 = scmp.lt.u32.totalorder %s979_s21, %s1246_s4 }
 0x355   : > { %p981_p7 = pnand %p980_p6, %p1138_p4 }
 0x356   : > { %p986_p12 = por %p985_p11, %p984_p10 }
 0x357   : > { %p982_p9 = pneg %p981_p7 }
 0x358   : > { %p988_p0 = por %p987_p13, %p986_p12 }
 0x35a   : > { %p989_p1 = pnand %p988_p0, %p982_p9 }
 0x35c   : > { %992 = shalt.err (!%p989_p1)
}
 0x35d   : > { %879 = dma.vmem_to_hbm [thread:$0]  (%p1138_p4), %s1248_s26, 16, %s1246_s4, %s729_s10  }
 0x35e PF: > { %p885_p2 = scmp.ge.s32.totalorder %s1043_s12, 2  ;;  %s753_s28 = sand.u32 1, %s1023_s29  }
 0x35f   : > { %s754_s13 = scalar_lea.sflag [#allocation8], %s753_s28 }
 0x360   : > { %p882_p3 = pnand %p885_p2, %p1145_p8 }
 0x362   : > { %1018 = dma.done.wait (!%p882_p3), %s754_s13, 16  }
 0x363   : > { %1020 = vsyncadd (!%p882_p3), %s754_s13, 4294967280  ;;  %s23_s12 = sadd.s32 1, %s1043_s12   ;;  %s1304_s29 = smov %s1027_s30 }
 0x364   : > { %p20_p5 = scmp.ge.s32.totalorder %s23_s12, 4   ;;  %s1305_s30 = smov %s1031_s9 }
 0x365   : > { %s1306_s9 = smov %s1151_s19  ;;  %s1307_s10 = smov %s1039_s11 }
 0x366   : > { %s1308_s11 = smov %s1310_s14  ;;  %22 = sbr.rel (!%p20_p5) target bundleno = 7 (0x7), region = 95 }
 0x36d   :  { %758 = vsyncpa [#allocation8], 1 }
 0x36e   :  { %760 = vsyncpa [#allocation8 + $0x1], 1 }

// kernel: _forward_impl.2
= control target key start
LH: loop header
LB: loop body
LE: loop exit
PB: predicated region body
PF: predicated region fallthrough
CT: control target
= control target key end

     0   :  { %15 = vsyncpa [#allocation4], 0  ;;  %s2189_s0 = inlined_call_operand.vmem [shape: f32[13], index: 0, kind: input, shape index: {}]   ;;  %s2190_s1 = inlined_call_operand.<no memory space> [shape: f32[1], index: 1, kind: input, shape index: {}]   ;;  %s2191_s2 = inlined_call_operand.vmem [shape: f32[32,128], index: 2, kind: input, shape index: {}]   ;;  %s2192_s3 = inlined_call_operand.vmem [shape: bf16[128,32], index: 3, kind: input, shape index: {}]   ;;  %s2193_s4 = inlined_call_operand.vmem [shape: f32[1,32], index: 4, kind: input, shape index: {}]   ;;  %s2194_s5 = inlined_call_operand.vmem [shape: bf16[12,32,32], index: 5, kind: input, shape index: {}]   ;;  %s2195_s6 = inlined_call_operand.vmem [shape: f32[12,1,32], index: 6, kind: input, shape index: {}]   ;;  %s2196_s7 = inlined_call_operand.vmem [shape: bf16[32,48], index: 7, kind: input, shape index: {}]   ;;  %s2197_s8 = inlined_call_operand.vmem [shape: f32[1,48], index: 8, kind: input, shape index: {}]   ;;  %s2198_s9 = inlined_call_operand.vmem [shape: bf16[32,48], index: 9, kind: output, shape index: {}]  }
   0x1   :  { %s22_s11 = sshll.u32 %s2189_s0, 4  ;;  %s23_s11 = int_to_ptr.vmem [resolvable:$true] %s22_s11 }
   0x2   :  { %s1924_s12 = scalar_lea.vmem %s23_s11, 16  ;;  %p1929_p1 = scmp.lt.s32.totalorder %s23_s11, %s23_s11 }
   0x3   :  { %p1925_p0 = scmp.ne.s32.totalorder %s23_s11, %s1924_s12  ;;  %p1930_p2 = scmp.lt.s32.totalorder %s1924_s12, %s1924_s12 }
   0x5   :  { %p1931_p3 = por %p1930_p2, %p1929_p1 }
   0x7   :  { %p1932_p4 = pnand %p1931_p3, %p1925_p0 }
   0x9   :  { %1935 = shalt.err (!%p1932_p4)
}
   0xa   :  { %s1938_s13 = smov [#allocation3]  }
   0xb   :  { %25 = dma.vmem_to_smem %s23_s11, 16, %s1938_s13, [#allocation4]  }
   0xc   :  { %1936 = dma.done.wait [#allocation4], 16  }
   0xd   :  { %1937 = vsyncadd [#allocation4], 4294967280 }
   0xe   :  { %45 = sfence }
   0xf   :  { %v1786_v0 = vld [vmem:[%s2192_s3] sm:$0xff]   ;;  %v1787_v1 = vld [vmem:[%s2192_s3 + $0x8] sm:$0xff]   ;;  %v1788_v2 = vld [vmem:[%s2192_s3 + $0x10] sm:$0xff]   ;;  %vm214_vm0 = vcmask 261120   ;;  %s177_s24 = sld [smem:[#allocation3]]  ;;  %s1464_s25 = sld [smem:[#allocation3 + $0x1]]  ;;  %v184_v44 = vstv %s2190_s1 }
  0x10   :  { %1661 = vmatprep.subr.bf16.mxu0 %v1786_v0  ;;  %v1789_v3 = vld [vmem:[%s2192_s3 + $0x18] sm:$0xff]   ;;  %v47_v4 = vld [vmem:[%s2191_s2] sm:$0xff]  ;;  %v48_v5 = vld [vmem:[%s2191_s2 + $0x8] sm:$0xff]  ;;  %s1475_s12 = sld [smem:[#allocation3 + $0x2]]  ;;  %s1486_s0 = sld [smem:[#allocation3 + $0x3]]  ;;  %vm1440_vm1 = vcmask 388096  }
  0x11   :  { %1662 = vmatpush3.bf16.msra.mxu0 %v1786_v0  ;;  %v51_v6 = vpack.c.bf16 %v48_v5, %v47_v4  ;;  %v1790_v7 = vld [vmem:[%s2192_s3 + $0x20] sm:$0xff]   ;;  %v1791_v8 = vld [vmem:[%s2192_s3 + $0x28] sm:$0xff]   ;;  %v1792_v9 = vld [vmem:[%s2192_s3 + $0x30] sm:$0xff]   ;;  %s1497_s22 = sld [smem:[#allocation3 + $0x4]]  ;;  %s1508_s28 = sld [smem:[#allocation3 + $0x5]] }
  0x12   :  { %1663 = vmatprep.subr.bf16.mxu0 %v1787_v1  ;;  %v1793_v10 = vld [vmem:[%s2192_s3 + $0x38] sm:$0xff]   ;;  %v49_v11 = vld [vmem:[%s2191_s2 + $0x10] sm:$0xff]  ;;  %v1794_v14 = vld [vmem:[%s2194_s5] sm:$0xff]   ;;  %s1519_s14 = sld [smem:[#allocation3 + $0x6]]  ;;  %s1530_s19 = sld [smem:[#allocation3 + $0x7]] }
  0x13   :  { %1677 = vmatprep.mubr.bf16.mxu0 %v51_v6  ;;  %v50_v12 = vld [vmem:[%s2191_s2 + $0x18] sm:$0xff]  ;;  %1681 = vmatprep.subr.bf16.mxu1 %v1794_v14  ;;  %v1795_v15 = vld [vmem:[%s2194_s5 + $0x8] sm:$0xff]   ;;  %v1450_v16 = vld [vmem:[%s2193_s4] ss:$0 sm:$0xff]  ;;  %s1552_s30 = sld [smem:[#allocation3 + $0x9]]  ;;  %s1563_s16 = sld [smem:[#allocation3 + $0xa]] }
  0x14   :  { %v52_v13 = vpack.c.bf16 %v50_v12, %v49_v11  ;;  %1682 = vmatpush3.bf16.msra.mxu1 %v1794_v14  ;;  %v1796_v31 = vld [vmem:[%s2194_s5 + $0x10] sm:$0xff]   ;;  %v1797_v32 = vld [vmem:[%s2194_s5 + $0x18] sm:$0xff]   ;;  %v1459_v33 = vld [vmem:[%s2195_s6] ss:$0 sm:$0xff]  ;;  %s1574_s4 = sld [smem:[#allocation3 + $0xb]] }
  0x15   :  { %1664 = vmatpush3.bf16.msra.mxu0 %v1787_v1  ;;  %1683 = vmatprep.subr.bf16.mxu1 %v1795_v15  ;;  %v178_v42 = vstv %s177_s24  ;;  %v275_v46 = vstv %s1464_s25  ;;  %v1799_v4 = vld [vmem:[%s2194_s5 + $0x28] sm:$0xff]   ;;  %v1470_v5 = vld [vmem:[%s2195_s6 + $0x1] ss:$0 sm:$0xff]  ;;  %s1541_s24 = sld [smem:[#allocation3 + $0x8]]  ;;  %s1585_s25 = sld [smem:[#allocation3 + $0xc]] }
  0x16   :  { %1665 = vmatprep.subr.bf16.mxu0 %v1788_v2  ;;  %v371_v14 = vstv %s1475_s12 }
  0x18   :  { %1684 = vmatpush3.bf16.msra.mxu1 %v1795_v15 }
  0x19   :  { %1666 = vmatpush3.bf16.msra.mxu0 %v1788_v2  ;;  %1689 = vmatprep.subr.bf16.mxu1 %v1796_v31 }
  0x1a   :  { %1667 = vmatprep.subr.bf16.mxu0 %v1789_v3 }
  0x1d   :  { %1668 = vmatpush3.bf16.msra.mxu0 %v1789_v3  ;;  %v1798_v3 = vld [vmem:[%s2194_s5 + $0x20] sm:$0xff]  }
  0x1e   :  { %1669 = vmatprep.subr.bf16.mxu0 %v1790_v7 }
  0x21   :  { %1670 = vmatpush3.bf16.msra.mxu0 %v1790_v7 }
  0x22   :  { %1671 = vmatprep.subr.bf16.mxu0 %v1791_v8 }
  0x25   :  { %1672 = vmatpush3.bf16.msra.mxu0 %v1791_v8 }
  0x26   :  { %1673 = vmatprep.subr.bf16.mxu0 %v1792_v9 }
  0x29   :  { %1674 = vmatpush3.bf16.msra.mxu0 %v1792_v9 }
  0x2a   :  { %1675 = vmatprep.subr.bf16.mxu0 %v1793_v10 }
  0x2d   :  { %1676 = vmatpush3.bf16.msra.mxu0 %v1793_v10 }
  0x30   :  { %1678 = vmatmul.mubr.bf16.vlgmr.msra.gmra.mrb[0].mxu0 %v52_v13 }
 0x103   :  { %v1679_v17 = vpop.f32.mrb[0].mxu0 }
 0x104   :  { %v167_v18 = vadd.f32 %v1679_v17, %v1450_v16  ;;  %v158_v19 = vpop.f32.mrb[1].mxu0 }
 0x105   :  { %v159_v20 = vadd.f32 %v1450_v16, %v158_v19  ;;  %v1680_v21 = vpop.f32.mrb[2].mxu0 }
 0x106   :  { %1820 = vtanh.f32 %v167_v18  ;;  %v170_v22 = vadd.f32 %v1680_v21, %v1450_v16  ;;  %v161_v23 = vpop.f32.mrb[3].mxu0 }
 0x107   :  { %1822 = vtanh.f32 %v159_v20  ;;  %v162_v24 = vadd.f32 %v1450_v16, %v161_v23 }
 0x108   :  { %1824 = vtanh.f32 %v170_v22 }
 0x109   :  { %1826 = vtanh.f32 %v162_v24 }
 0x110   :  { %v1821_v25 = vpop.eup %1820 }
 0x111   :  { %v1823_v26 = vpop.eup %1822  ;;  %v181_v43 = vmul.f32 %v1821_v25, %v178_v42 }
 0x112   :  { %v1825_v27 = vpop.eup %1824  ;;  %v179_v45 = vmul.f32 %v1823_v26, %v178_v42 }
 0x113   :  { %v1827_v28 = vpop.eup %1826  ;;  %v190_v29 = vpack.c.bf16 %v1825_v27, %v1821_v25  ;;  %v182_v47 = vmul.f32 %v1825_v27, %v178_v42  ;;  %v187_v51 = vadd.f32 %v184_v44, %v181_v43 }
 0x114   :  { %v189_v30 = vpack.c.bf16 %v1827_v28, %v1823_v26  ;;  %v180_v49 = vmul.f32 %v1827_v28, %v178_v42  ;;  %v185_v54 = vadd.f32 %v184_v44, %v179_v45 }
 0x115   :  { %v188_v57 = vadd.f32 %v184_v44, %v182_v47 }
 0x116   :  { %1685 = vmatprep.mubr.msk.bf16.mxu1 %vm214_vm0, %v189_v30  ;;  %v186_v61 = vadd.f32 %v184_v44, %v180_v49  ;;  %v1801_v30 = vld [vmem:[%s2194_s5 + $0x38] sm:$0xff]  }
 0x117   :  { %1686 = vmatmul.mubr.msk.bf16.vlgmr.msra.gmra.mrb[0].mxu1 %vm214_vm0, %v190_v29  ;;  %v1800_v29 = vld [vmem:[%s2194_s5 + $0x30] sm:$0xff]  }
 0x118   :  { %1690 = vmatpush3.bf16.msra.mxu1 %v1796_v31  ;;  %v1481_v31 = vld [vmem:[%s2195_s6 + $0x2] ss:$0 sm:$0xff] }
 0x119   :  { %1691 = vmatprep.subr.bf16.mxu1 %v1797_v32 }
 0x11c   :  { %1692 = vmatpush3.bf16.msra.mxu1 %v1797_v32 }
 0x11d   :  { %1697 = vmatprep.subr.bf16.mxu1 %v1798_v3 }
 0x1ea   :  { %v1687_v34 = vpop.f32.mrb[0].mxu1 }
 0x1eb   :  { %v264_v35 = vadd.f32 %v1687_v34, %v1459_v33  ;;  %v255_v36 = vpop.f32.mrb[1].mxu1 }
 0x1ec   :  { %v256_v37 = vadd.f32 %v1459_v33, %v255_v36  ;;  %v1688_v38 = vpop.f32.mrb[2].mxu1 }
 0x1ed   :  { %1828 = vtanh.f32 %v264_v35  ;;  %v267_v39 = vadd.f32 %v1688_v38, %v1459_v33  ;;  %v258_v40 = vpop.f32.mrb[3].mxu1 }
 0x1ee   :  { %1830 = vtanh.f32 %v256_v37  ;;  %v259_v41 = vadd.f32 %v1459_v33, %v258_v40  ;;  %v467_v40 = vstv %s1486_s0 }
 0x1ef   :  { %1832 = vtanh.f32 %v267_v39 }
 0x1f0   :  { %1834 = vtanh.f32 %v259_v41 }
 0x1f7   :  { %v1829_v48 = vpop.eup %1828 }
 0x1f8   :  { %v1831_v50 = vpop.eup %1830  ;;  %v278_v52 = vmul.f32 %v1829_v48, %v275_v46 }
 0x1f9   :  { %v1833_v53 = vpop.eup %1832  ;;  %v276_v55 = vmul.f32 %v1831_v50, %v275_v46 }
 0x1fa   :  { %v1835_v56 = vpop.eup %1834  ;;  %v282_v58 = vadd.f32 %v278_v52, %v187_v51  ;;  %v279_v59 = vmul.f32 %v1833_v53, %v275_v46  ;;  %v285_v60 = vpack.c.bf16 %v1833_v53, %v1829_v48 }
 0x1fb   :  { %v280_v62 = vadd.f32 %v276_v55, %v185_v54  ;;  %v277_v63 = vmul.f32 %v1835_v56, %v275_v46  ;;  %v284_v0 = vpack.c.bf16 %v1835_v56, %v1831_v50  ;;  %v1802_v55 = vld [vmem:[%s2194_s5 + $0x40] sm:$0xff]   ;;  %v1803_v56 = vld [vmem:[%s2194_s5 + $0x48] sm:$0xff]  }
 0x1fc   :  { %v283_v1 = vadd.f32 %v279_v59, %v188_v57  ;;  %1713 = vmatprep.subr.bf16.mxu0 %v1802_v55  ;;  %v1492_v57 = vld [vmem:[%s2195_s6 + $0x3] ss:$0 sm:$0xff] }
 0x1fd   :  { %v281_v2 = vadd.f32 %v277_v63, %v186_v61  ;;  %1693 = vmatprep.mubr.msk.bf16.mxu1 %vm214_vm0, %v284_v0  ;;  %1714 = vmatpush3.bf16.msra.mxu0 %v1802_v55 }
 0x1fe   :  { %1694 = vmatmul.mubr.msk.bf16.vlgmr.msra.gmra.mrb[4].mxu1 %vm214_vm0, %v285_v60  ;;  %1715 = vmatprep.subr.bf16.mxu0 %v1803_v56 }
 0x1ff   :  { %1698 = vmatpush3.bf16.msra.mxu1 %v1798_v3 }
 0x200   :  { %1699 = vmatprep.subr.bf16.mxu1 %v1799_v4 }
 0x201   :  { %1716 = vmatpush3.bf16.msra.mxu0 %v1803_v56 }
 0x203   :  { %1700 = vmatpush3.bf16.msra.mxu1 %v1799_v4 }
 0x204   :  { %1705 = vmatprep.subr.bf16.mxu1 %v1800_v29 }
 0x2d1   :  { %v1695_v6 = vpop.f32.mrb[4].mxu1 }
 0x2d2   :  { %v360_v7 = vadd.f32 %v1695_v6, %v1470_v5  ;;  %v351_v8 = vpop.f32.mrb[5].mxu1 }
 0x2d3   :  { %v352_v9 = vadd.f32 %v1470_v5, %v351_v8  ;;  %v1696_v10 = vpop.f32.mrb[6].mxu1 }
 0x2d4   :  { %1836 = vtanh.f32 %v360_v7  ;;  %v363_v11 = vadd.f32 %v1696_v10, %v1470_v5  ;;  %v354_v12 = vpop.f32.mrb[7].mxu1 }
 0x2d5   :  { %1838 = vtanh.f32 %v352_v9  ;;  %v355_v13 = vadd.f32 %v1470_v5, %v354_v12 }
 0x2d6   :  { %1840 = vtanh.f32 %v363_v11 }
 0x2d7   :  { %1842 = vtanh.f32 %v355_v13 }
 0x2de   :  { %v1837_v15 = vpop.eup %1836 }
 0x2df   :  { %v1839_v16 = vpop.eup %1838  ;;  %v374_v17 = vmul.f32 %v1837_v15, %v371_v14 }
 0x2e0   :  { %v1841_v18 = vpop.eup %1840  ;;  %v372_v19 = vmul.f32 %v1839_v16, %v371_v14 }
 0x2e1   :  { %v1843_v20 = vpop.eup %1842  ;;  %v378_v21 = vadd.f32 %v374_v17, %v282_v58  ;;  %v375_v22 = vmul.f32 %v1841_v18, %v371_v14  ;;  %v381_v23 = vpack.c.bf16 %v1841_v18, %v1837_v15  ;;  %v1804_v17 = vld [vmem:[%s2194_s5 + $0x50] sm:$0xff]   ;;  %v1805_v18 = vld [vmem:[%s2194_s5 + $0x58] sm:$0xff]  }
 0x2e2   :  { %v376_v24 = vadd.f32 %v372_v19, %v280_v62  ;;  %v373_v25 = vmul.f32 %v1843_v20, %v371_v14  ;;  %v380_v26 = vpack.c.bf16 %v1843_v20, %v1839_v16  ;;  %v1503_v19 = vld [vmem:[%s2195_s6 + $0x4] ss:$0 sm:$0xff] }
 0x2e3   :  { %v379_v27 = vadd.f32 %v375_v22, %v283_v1 }
 0x2e4   :  { %v377_v28 = vadd.f32 %v373_v25, %v281_v2  ;;  %1701 = vmatprep.mubr.msk.bf16.mxu1 %vm214_vm0, %v380_v26  ;;  %v563_v2 = vstv %s1497_s22 }
 0x2e5   :  { %1702 = vmatmul.mubr.msk.bf16.vlgmr.msra.gmra.mrb[8].mxu1 %vm214_vm0, %v381_v23 }
 0x2e6   :  { %1706 = vmatpush3.bf16.msra.mxu1 %v1800_v29 }
 0x2e7   :  { %1707 = vmatprep.subr.bf16.mxu1 %v1801_v30 }
 0x2ea   :  { %1708 = vmatpush3.bf16.msra.mxu1 %v1801_v30 }
 0x2eb   :  { %1721 = vmatprep.subr.bf16.mxu1 %v1804_v17 }
 0x3b8   :  { %v1703_v32 = vpop.f32.mrb[8].mxu1 }
 0x3b9   :  { %v456_v33 = vadd.f32 %v1703_v32, %v1481_v31  ;;  %v447_v34 = vpop.f32.mrb[9].mxu1 }
 0x3ba   :  { %v448_v35 = vadd.f32 %v1481_v31, %v447_v34  ;;  %v1704_v36 = vpop.f32.mrb[10].mxu1 }
 0x3bb   :  { %1844 = vtanh.f32 %v456_v33  ;;  %v459_v37 = vadd.f32 %v1704_v36, %v1481_v31  ;;  %v450_v38 = vpop.f32.mrb[11].mxu1 }
 0x3bc   :  { %1846 = vtanh.f32 %v448_v35  ;;  %v451_v39 = vadd.f32 %v1481_v31, %v450_v38 }
 0x3bd   :  { %1848 = vtanh.f32 %v459_v37 }
 0x3be   :  { %1850 = vtanh.f32 %v451_v39 }
 0x3c5   :  { %v1845_v41 = vpop.eup %1844 }
 0x3c6   :  { %v1847_v42 = vpop.eup %1846  ;;  %v470_v43 = vmul.f32 %v1845_v41, %v467_v40 }
 0x3c7   :  { %v1849_v44 = vpop.eup %1848  ;;  %v468_v45 = vmul.f32 %v1847_v42, %v467_v40 }
 0x3c8   :  { %v1851_v46 = vpop.eup %1850  ;;  %v474_v47 = vadd.f32 %v470_v43, %v378_v21  ;;  %v471_v48 = vmul.f32 %v1849_v44, %v467_v40  ;;  %v477_v49 = vpack.c.bf16 %v1849_v44, %v1845_v41  ;;  %v1806_v43 = vld [vmem:[%s2194_s5 + $0x60] sm:$0xff]   ;;  %v1807_v44 = vld [vmem:[%s2194_s5 + $0x68] sm:$0xff]  }
 0x3c9   :  { %v472_v50 = vadd.f32 %v468_v45, %v376_v24  ;;  %v469_v51 = vmul.f32 %v1851_v46, %v467_v40  ;;  %v476_v52 = vpack.c.bf16 %v1851_v46, %v1847_v42  ;;  %1729 = vmatprep.subr.bf16.mxu0 %v1806_v43  ;;  %v1514_v45 = vld [vmem:[%s2195_s6 + $0x5] ss:$0 sm:$0xff] }
 0x3ca   :  { %v475_v53 = vadd.f32 %v471_v48, %v379_v27 }
 0x3cb   :  { %v473_v54 = vadd.f32 %v469_v51, %v377_v28  ;;  %1709 = vmatprep.mubr.msk.bf16.mxu1 %vm214_vm0, %v476_v52  ;;  %v659_v28 = vstv %s1508_s28 }
 0x3cc   :  { %1710 = vmatmul.mubr.msk.bf16.vlgmr.msra.gmra.mrb[12].mxu1 %vm214_vm0, %v477_v49 }
 0x3cd   :  { %1722 = vmatpush3.bf16.msra.mxu1 %v1804_v17 }
 0x3ce   :  { %1723 = vmatprep.subr.bf16.mxu1 %v1805_v18 }
 0x3d1   :  { %1724 = vmatpush3.bf16.msra.mxu1 %v1805_v18 }
 0x49f   :  { %v1711_v58 = vpop.f32.mrb[12].mxu1 }
 0x4a0   :  { %v552_v59 = vadd.f32 %v1711_v58, %v1492_v57  ;;  %v543_v60 = vpop.f32.mrb[13].mxu1 }
 0x4a1   :  { %v544_v61 = vadd.f32 %v1492_v57, %v543_v60  ;;  %v1712_v62 = vpop.f32.mrb[14].mxu1 }
 0x4a2   :  { %1852 = vtanh.f32 %v552_v59  ;;  %v555_v63 = vadd.f32 %v1712_v62, %v1492_v57  ;;  %v546_v0 = vpop.f32.mrb[15].mxu1 }
 0x4a3   :  { %1854 = vtanh.f32 %v544_v61  ;;  %v547_v1 = vadd.f32 %v1492_v57, %v546_v0 }
 0x4a4   :  { %1856 = vtanh.f32 %v555_v63 }
 0x4a5   :  { %1858 = vtanh.f32 %v547_v1 }
 0x4ac   :  { %v1853_v3 = vpop.eup %1852 }
 0x4ad   :  { %v1855_v4 = vpop.eup %1854  ;;  %v566_v5 = vmul.f32 %v1853_v3, %v563_v2 }
 0x4ae   :  { %v1857_v6 = vpop.eup %1856  ;;  %v564_v7 = vmul.f32 %v1855_v4, %v563_v2 }
 0x4af   :  { %v1859_v8 = vpop.eup %1858  ;;  %v570_v9 = vadd.f32 %v566_v5, %v474_v47  ;;  %v567_v10 = vmul.f32 %v1857_v6, %v563_v2  ;;  %v573_v11 = vpack.c.bf16 %v1857_v6, %v1853_v3  ;;  %v1808_v5 = vld [vmem:[%s2194_s5 + $0x70] sm:$0xff]   ;;  %v1809_v6 = vld [vmem:[%s2194_s5 + $0x78] sm:$0xff]  }
 0x4b0   :  { %v568_v12 = vadd.f32 %v564_v7, %v472_v50  ;;  %v565_v13 = vmul.f32 %v1859_v8, %v563_v2  ;;  %v572_v14 = vpack.c.bf16 %v1859_v8, %v1855_v4  ;;  %1737 = vmatprep.subr.bf16.mxu1 %v1808_v5  ;;  %v1525_v7 = vld [vmem:[%s2195_s6 + $0x6] ss:$0 sm:$0xff] }
 0x4b1   :  { %v571_v15 = vadd.f32 %v567_v10, %v475_v53 }
 0x4b2   :  { %v569_v16 = vadd.f32 %v565_v13, %v473_v54  ;;  %1717 = vmatprep.mubr.msk.bf16.mxu0 %vm214_vm0, %v572_v14  ;;  %v755_v54 = vstv %s1519_s14 }
 0x4b3   :  { %1718 = vmatmul.mubr.msk.bf16.vlgmr.msra.gmra.mrb[4].mxu0 %vm214_vm0, %v573_v11 }
 0x4b4   :  { %1730 = vmatpush3.bf16.msra.mxu0 %v1806_v43 }
 0x4b5   :  { %1731 = vmatprep.subr.bf16.mxu0 %v1807_v44 }
 0x4b8   :  { %1732 = vmatpush3.bf16.msra.mxu0 %v1807_v44 }
 0x586   :  { %v1719_v20 = vpop.f32.mrb[4].mxu0 }
 0x587   :  { %v648_v21 = vadd.f32 %v1719_v20, %v1503_v19  ;;  %v639_v22 = vpop.f32.mrb[5].mxu0 }
 0x588   :  { %v640_v23 = vadd.f32 %v1503_v19, %v639_v22  ;;  %v1720_v24 = vpop.f32.mrb[6].mxu0 }
 0x589   :  { %1860 = vtanh.f32 %v648_v21  ;;  %v651_v25 = vadd.f32 %v1720_v24, %v1503_v19  ;;  %v642_v26 = vpop.f32.mrb[7].mxu0 }
 0x58a   :  { %1862 = vtanh.f32 %v640_v23  ;;  %v643_v27 = vadd.f32 %v1503_v19, %v642_v26 }
 0x58b   :  { %1864 = vtanh.f32 %v651_v25 }
 0x58c   :  { %1866 = vtanh.f32 %v643_v27 }
 0x593   :  { %v1861_v29 = vpop.eup %1860 }
 0x594   :  { %v1863_v30 = vpop.eup %1862  ;;  %v662_v31 = vmul.f32 %v1861_v29, %v659_v28 }
 0x595   :  { %v1865_v32 = vpop.eup %1864  ;;  %v660_v33 = vmul.f32 %v1863_v30, %v659_v28 }
 0x596   :  { %v1867_v34 = vpop.eup %1866  ;;  %v666_v35 = vadd.f32 %v662_v31, %v570_v9  ;;  %v663_v36 = vmul.f32 %v1865_v32, %v659_v28  ;;  %v669_v37 = vpack.c.bf16 %v1865_v32, %v1861_v29  ;;  %v1810_v31 = vld [vmem:[%s2194_s5 + $0x80] sm:$0xff]   ;;  %v1811_v32 = vld [vmem:[%s2194_s5 + $0x88] sm:$0xff]  }
 0x597   :  { %v664_v38 = vadd.f32 %v660_v33, %v568_v12  ;;  %v661_v39 = vmul.f32 %v1867_v34, %v659_v28  ;;  %v668_v40 = vpack.c.bf16 %v1867_v34, %v1863_v30  ;;  %1745 = vmatprep.subr.bf16.mxu0 %v1810_v31  ;;  %v1536_v33 = vld [vmem:[%s2195_s6 + $0x7] ss:$0 sm:$0xff] }
 0x598   :  { %v667_v41 = vadd.f32 %v663_v36, %v571_v15 }
 0x599   :  { %v665_v42 = vadd.f32 %v661_v39, %v569_v16  ;;  %1725 = vmatprep.mubr.msk.bf16.mxu1 %vm214_vm0, %v668_v40  ;;  %v851_v16 = vstv %s1530_s19 }
 0x59a   :  { %1726 = vmatmul.mubr.msk.bf16.vlgmr.msra.gmra.mrb[16].mxu1 %vm214_vm0, %v669_v37 }
 0x59b   :  { %1738 = vmatpush3.bf16.msra.mxu1 %v1808_v5 }
 0x59c   :  { %1739 = vmatprep.subr.bf16.mxu1 %v1809_v6 }
 0x59f   :  { %1740 = vmatpush3.bf16.msra.mxu1 %v1809_v6 }
 0x66d   :  { %v1727_v46 = vpop.f32.mrb[16].mxu1 }
 0x66e   :  { %v744_v47 = vadd.f32 %v1727_v46, %v1514_v45  ;;  %v735_v48 = vpop.f32.mrb[17].mxu1 }
 0x66f   :  { %v736_v49 = vadd.f32 %v1514_v45, %v735_v48  ;;  %v1728_v50 = vpop.f32.mrb[18].mxu1 }
 0x670   :  { %1868 = vtanh.f32 %v744_v47  ;;  %v747_v51 = vadd.f32 %v1728_v50, %v1514_v45  ;;  %v738_v52 = vpop.f32.mrb[19].mxu1 }
 0x671   :  { %1870 = vtanh.f32 %v736_v49  ;;  %v739_v53 = vadd.f32 %v1514_v45, %v738_v52 }
 0x672   :  { %1872 = vtanh.f32 %v747_v51 }
 0x673   :  { %1874 = vtanh.f32 %v739_v53 }
 0x67a   :  { %v1869_v55 = vpop.eup %1868 }
 0x67b   :  { %v1871_v56 = vpop.eup %1870  ;;  %v758_v57 = vmul.f32 %v1869_v55, %v755_v54 }
 0x67c   :  { %v1873_v58 = vpop.eup %1872  ;;  %v756_v59 = vmul.f32 %v1871_v56, %v755_v54 }
 0x67d   :  { %v1875_v60 = vpop.eup %1874  ;;  %v762_v61 = vadd.f32 %v758_v57, %v666_v35  ;;  %v759_v62 = vmul.f32 %v1873_v58, %v755_v54  ;;  %v765_v63 = vpack.c.bf16 %v1873_v58, %v1869_v55  ;;  %v1812_v57 = vld [vmem:[%s2194_s5 + $0x90] sm:$0xff]   ;;  %v1813_v58 = vld [vmem:[%s2194_s5 + $0x98] sm:$0xff]  }
 0x67e   :  { %v760_v0 = vadd.f32 %v756_v59, %v664_v38  ;;  %v757_v1 = vmul.f32 %v1875_v60, %v755_v54  ;;  %v764_v2 = vpack.c.bf16 %v1875_v60, %v1871_v56  ;;  %1753 = vmatprep.subr.bf16.mxu1 %v1812_v57  ;;  %v1547_v59 = vld [vmem:[%s2195_s6 + $0x8] ss:$0 sm:$0xff] }
 0x67f   :  { %v763_v3 = vadd.f32 %v759_v62, %v667_v41 }
 0x680   :  { %v761_v4 = vadd.f32 %v757_v1, %v665_v42  ;;  %1733 = vmatprep.mubr.msk.bf16.mxu0 %vm214_vm0, %v764_v2  ;;  %v947_v42 = vstv %s1541_s24 }
 0x681   :  { %1734 = vmatmul.mubr.msk.bf16.vlgmr.msra.gmra.mrb[8].mxu0 %vm214_vm0, %v765_v63 }
 0x682   :  { %1746 = vmatpush3.bf16.msra.mxu0 %v1810_v31 }
 0x683   :  { %1747 = vmatprep.subr.bf16.mxu0 %v1811_v32 }
 0x686   :  { %1748 = vmatpush3.bf16.msra.mxu0 %v1811_v32 }
 0x754   :  { %v1735_v8 = vpop.f32.mrb[8].mxu0 }
 0x755   :  { %v840_v9 = vadd.f32 %v1735_v8, %v1525_v7  ;;  %v831_v10 = vpop.f32.mrb[9].mxu0 }
 0x756   :  { %v832_v11 = vadd.f32 %v1525_v7, %v831_v10  ;;  %v1736_v12 = vpop.f32.mrb[10].mxu0 }
 0x757   :  { %1876 = vtanh.f32 %v840_v9  ;;  %v843_v13 = vadd.f32 %v1736_v12, %v1525_v7  ;;  %v834_v14 = vpop.f32.mrb[11].mxu0 }
 0x758   :  { %1878 = vtanh.f32 %v832_v11  ;;  %v835_v15 = vadd.f32 %v1525_v7, %v834_v14 }
 0x759   :  { %1880 = vtanh.f32 %v843_v13 }
 0x75a   :  { %1882 = vtanh.f32 %v835_v15 }
 0x761   :  { %v1877_v17 = vpop.eup %1876 }
 0x762   :  { %v1879_v18 = vpop.eup %1878  ;;  %v854_v19 = vmul.f32 %v1877_v17, %v851_v16 }
 0x763   :  { %v1881_v20 = vpop.eup %1880  ;;  %v852_v21 = vmul.f32 %v1879_v18, %v851_v16 }
 0x764   :  { %v1883_v22 = vpop.eup %1882  ;;  %v858_v23 = vadd.f32 %v854_v19, %v762_v61  ;;  %v855_v24 = vmul.f32 %v1881_v20, %v851_v16  ;;  %v861_v25 = vpack.c.bf16 %v1881_v20, %v1877_v17  ;;  %v1814_v19 = vld [vmem:[%s2194_s5 + $0xa0] sm:$0xff]   ;;  %v1815_v20 = vld [vmem:[%s2194_s5 + $0xa8] sm:$0xff]  }
 0x765   :  { %v856_v26 = vadd.f32 %v852_v21, %v760_v0  ;;  %v853_v27 = vmul.f32 %v1883_v22, %v851_v16  ;;  %v860_v28 = vpack.c.bf16 %v1883_v22, %v1879_v18  ;;  %1761 = vmatprep.subr.bf16.mxu0 %v1814_v19  ;;  %v1558_v21 = vld [vmem:[%s2195_s6 + $0x9] ss:$0 sm:$0xff] }
 0x766   :  { %v859_v29 = vadd.f32 %v855_v24, %v763_v3 }
 0x767   :  { %v857_v30 = vadd.f32 %v853_v27, %v761_v4  ;;  %1741 = vmatprep.mubr.msk.bf16.mxu1 %vm214_vm0, %v860_v28  ;;  %v1043_v4 = vstv %s1552_s30 }
 0x768   :  { %1742 = vmatmul.mubr.msk.bf16.vlgmr.msra.gmra.mrb[20].mxu1 %vm214_vm0, %v861_v25 }
 0x769   :  { %1754 = vmatpush3.bf16.msra.mxu1 %v1812_v57 }
 0x76a   :  { %1755 = vmatprep.subr.bf16.mxu1 %v1813_v58 }
 0x76d   :  { %1756 = vmatpush3.bf16.msra.mxu1 %v1813_v58 }
 0x83b   :  { %v1743_v34 = vpop.f32.mrb[20].mxu1 }
 0x83c   :  { %v936_v35 = vadd.f32 %v1743_v34, %v1536_v33  ;;  %v927_v36 = vpop.f32.mrb[21].mxu1 }
 0x83d   :  { %v928_v37 = vadd.f32 %v1536_v33, %v927_v36  ;;  %v1744_v38 = vpop.f32.mrb[22].mxu1 }
 0x83e   :  { %1884 = vtanh.f32 %v936_v35  ;;  %v939_v39 = vadd.f32 %v1744_v38, %v1536_v33  ;;  %v930_v40 = vpop.f32.mrb[23].mxu1 }
 0x83f   :  { %1886 = vtanh.f32 %v928_v37  ;;  %v931_v41 = vadd.f32 %v1536_v33, %v930_v40 }
 0x840   :  { %1888 = vtanh.f32 %v939_v39 }
 0x841   :  { %1890 = vtanh.f32 %v931_v41 }
 0x848   :  { %v1885_v43 = vpop.eup %1884 }
 0x849   :  { %v1887_v44 = vpop.eup %1886  ;;  %v950_v45 = vmul.f32 %v1885_v43, %v947_v42 }
 0x84a   :  { %v1889_v46 = vpop.eup %1888  ;;  %v948_v47 = vmul.f32 %v1887_v44, %v947_v42 }
 0x84b   :  { %v1891_v48 = vpop.eup %1890  ;;  %v954_v49 = vadd.f32 %v950_v45, %v858_v23  ;;  %v951_v50 = vmul.f32 %v1889_v46, %v947_v42  ;;  %v957_v51 = vpack.c.bf16 %v1889_v46, %v1885_v43  ;;  %v1816_v45 = vld [vmem:[%s2194_s5 + $0xb0] sm:$0xff]   ;;  %v1817_v46 = vld [vmem:[%s2194_s5 + $0xb8] sm:$0xff]  }
 0x84c   :  { %v952_v52 = vadd.f32 %v948_v47, %v856_v26  ;;  %v949_v53 = vmul.f32 %v1891_v48, %v947_v42  ;;  %v956_v54 = vpack.c.bf16 %v1891_v48, %v1887_v44  ;;  %1769 = vmatprep.subr.bf16.mxu1 %v1816_v45  ;;  %v1569_v47 = vld [vmem:[%s2195_s6 + $0xa] ss:$0 sm:$0xff] }
 0x84d   :  { %v955_v55 = vadd.f32 %v951_v50, %v859_v29 }
 0x84e   :  { %v953_v56 = vadd.f32 %v949_v53, %v857_v30  ;;  %1749 = vmatprep.mubr.msk.bf16.mxu0 %vm214_vm0, %v956_v54  ;;  %v1139_v30 = vstv %s1563_s16 }
 0x84f   :  { %1750 = vmatmul.mubr.msk.bf16.vlgmr.msra.gmra.mrb[12].mxu0 %vm214_vm0, %v957_v51 }
 0x850   :  { %1762 = vmatpush3.bf16.msra.mxu0 %v1814_v19 }
 0x851   :  { %1763 = vmatprep.subr.bf16.mxu0 %v1815_v20 }
 0x854   :  { %1764 = vmatpush3.bf16.msra.mxu0 %v1815_v20 }
 0x922   :  { %v1751_v60 = vpop.f32.mrb[12].mxu0 }
 0x923   :  { %v1032_v61 = vadd.f32 %v1751_v60, %v1547_v59  ;;  %v1023_v62 = vpop.f32.mrb[13].mxu0 }
 0x924   :  { %v1024_v63 = vadd.f32 %v1547_v59, %v1023_v62  ;;  %v1752_v0 = vpop.f32.mrb[14].mxu0 }
 0x925   :  { %1892 = vtanh.f32 %v1032_v61  ;;  %v1035_v1 = vadd.f32 %v1752_v0, %v1547_v59  ;;  %v1026_v2 = vpop.f32.mrb[15].mxu0 }
 0x926   :  { %1894 = vtanh.f32 %v1024_v63  ;;  %v1027_v3 = vadd.f32 %v1547_v59, %v1026_v2 }
 0x927   :  { %1896 = vtanh.f32 %v1035_v1 }
 0x928   :  { %1898 = vtanh.f32 %v1027_v3 }
 0x92f   :  { %v1893_v5 = vpop.eup %1892 }
 0x930   :  { %v1895_v6 = vpop.eup %1894  ;;  %v1046_v7 = vmul.f32 %v1893_v5, %v1043_v4 }
 0x931   :  { %v1897_v8 = vpop.eup %1896  ;;  %v1044_v9 = vmul.f32 %v1895_v6, %v1043_v4 }
 0x932   :  { %v1899_v10 = vpop.eup %1898  ;;  %v1050_v11 = vadd.f32 %v1046_v7, %v954_v49  ;;  %v1047_v12 = vmul.f32 %v1897_v8, %v1043_v4  ;;  %v1053_v13 = vpack.c.bf16 %v1897_v8, %v1893_v5  ;;  %v1818_v7 = vld [vmem:[%s2196_s7] sm:$0xff]   ;;  %v1819_v8 = vld [vmem:[%s2196_s7 + $0x8] sm:$0xff]  }
 0x933   :  { %v1048_v14 = vadd.f32 %v1044_v9, %v952_v52  ;;  %v1045_v15 = vmul.f32 %v1899_v10, %v1043_v4  ;;  %v1052_v16 = vpack.c.bf16 %v1899_v10, %v1895_v6  ;;  %1777 = vmatprep.subr.bf16.mxu0 %v1818_v7  ;;  %v1580_v9 = vld [vmem:[%s2195_s6 + $0xb] ss:$0 sm:$0xff] }
 0x934   :  { %v1051_v17 = vadd.f32 %v1047_v12, %v955_v55 }
 0x935   :  { %v1049_v18 = vadd.f32 %v1045_v15, %v953_v56  ;;  %1757 = vmatprep.mubr.msk.bf16.mxu1 %vm214_vm0, %v1052_v16  ;;  %v1235_v56 = vstv %s1574_s4 }
 0x936   :  { %1758 = vmatmul.mubr.msk.bf16.vlgmr.msra.gmra.mrb[24].mxu1 %vm214_vm0, %v1053_v13 }
 0x937   :  { %1770 = vmatpush3.bf16.msra.mxu1 %v1816_v45 }
 0x938   :  { %1771 = vmatprep.subr.bf16.mxu1 %v1817_v46 }
 0x93b   :  { %1772 = vmatpush3.bf16.msra.mxu1 %v1817_v46 }
 0xa09   :  { %v1759_v22 = vpop.f32.mrb[24].mxu1 }
 0xa0a   :  { %v1128_v23 = vadd.f32 %v1759_v22, %v1558_v21  ;;  %v1119_v24 = vpop.f32.mrb[25].mxu1 }
 0xa0b   :  { %v1120_v25 = vadd.f32 %v1558_v21, %v1119_v24  ;;  %v1760_v26 = vpop.f32.mrb[26].mxu1 }
 0xa0c   :  { %1900 = vtanh.f32 %v1128_v23  ;;  %v1131_v27 = vadd.f32 %v1760_v26, %v1558_v21  ;;  %v1122_v28 = vpop.f32.mrb[27].mxu1 }
 0xa0d   :  { %1902 = vtanh.f32 %v1120_v25  ;;  %v1123_v29 = vadd.f32 %v1558_v21, %v1122_v28 }
 0xa0e   :  { %1904 = vtanh.f32 %v1131_v27 }
 0xa0f   :  { %1906 = vtanh.f32 %v1123_v29 }
 0xa16   :  { %v1901_v31 = vpop.eup %1900 }
 0xa17   :  { %v1903_v32 = vpop.eup %1902  ;;  %v1142_v33 = vmul.f32 %v1901_v31, %v1139_v30 }
 0xa18   :  { %v1905_v34 = vpop.eup %1904  ;;  %v1140_v35 = vmul.f32 %v1903_v32, %v1139_v30 }
 0xa19   :  { %v1907_v36 = vpop.eup %1906  ;;  %v1146_v37 = vadd.f32 %v1142_v33, %v1050_v11  ;;  %v1143_v38 = vmul.f32 %v1905_v34, %v1139_v30  ;;  %v1149_v39 = vpack.c.bf16 %v1905_v34, %v1901_v31  ;;  %v1586_v33 = vld [vmem:[%s2197_s8] ss:$0 sm:$0xff] }
 0xa1a   :  { %v1141_v40 = vmul.f32 %v1907_v36, %v1139_v30  ;;  %v1148_v41 = vpack.c.bf16 %v1907_v36, %v1903_v32  ;;  %v1144_v42 = vadd.f32 %v1140_v35, %v1048_v14 }
 0xa1b   :  { %v1147_v43 = vadd.f32 %v1143_v38, %v1051_v17 }
 0xa1c   :  { %1765 = vmatprep.mubr.msk.bf16.mxu0 %vm214_vm0, %v1148_v41  ;;  %v1145_v44 = vadd.f32 %v1141_v40, %v1049_v18  ;;  %v1331_v18 = vstv %s1585_s25 }
 0xa1d   :  { %1766 = vmatmul.mubr.msk.bf16.vlgmr.msra.gmra.mrb[16].mxu0 %vm214_vm0, %v1149_v39 }
 0xa1e   :  { %1778 = vmatpush3.bf16.msra.mxu0 %v1818_v7 }
 0xa1f   :  { %1779 = vmatprep.subr.bf16.mxu0 %v1819_v8 }
 0xa22   :  { %1780 = vmatpush3.bf16.msra.mxu0 %v1819_v8 }
 0xaf0   :  { %v1767_v48 = vpop.f32.mrb[16].mxu0 }
 0xaf1   :  { %v1224_v49 = vadd.f32 %v1767_v48, %v1569_v47  ;;  %v1215_v50 = vpop.f32.mrb[17].mxu0 }
 0xaf2   :  { %v1216_v51 = vadd.f32 %v1569_v47, %v1215_v50  ;;  %v1768_v52 = vpop.f32.mrb[18].mxu0 }
 0xaf3   :  { %1908 = vtanh.f32 %v1224_v49  ;;  %v1227_v53 = vadd.f32 %v1768_v52, %v1569_v47  ;;  %v1218_v54 = vpop.f32.mrb[19].mxu0 }
 0xaf4   :  { %1910 = vtanh.f32 %v1216_v51  ;;  %v1219_v55 = vadd.f32 %v1569_v47, %v1218_v54 }
 0xaf5   :  { %1912 = vtanh.f32 %v1227_v53 }
 0xaf6   :  { %1914 = vtanh.f32 %v1219_v55 }
 0xafd   :  { %v1909_v57 = vpop.eup %1908 }
 0xafe   :  { %v1911_v58 = vpop.eup %1910  ;;  %v1238_v59 = vmul.f32 %v1909_v57, %v1235_v56 }
 0xaff   :  { %v1913_v60 = vpop.eup %1912  ;;  %v1236_v61 = vmul.f32 %v1911_v58, %v1235_v56 }
 0xb00   :  { %v1915_v62 = vpop.eup %1914  ;;  %v1242_v63 = vadd.f32 %v1238_v59, %v1146_v37  ;;  %v1239_v0 = vmul.f32 %v1913_v60, %v1235_v56  ;;  %v1245_v1 = vpack.c.bf16 %v1913_v60, %v1909_v57 }
 0xb01   :  { %v1237_v2 = vmul.f32 %v1915_v62, %v1235_v56  ;;  %v1244_v3 = vpack.c.bf16 %v1915_v62, %v1911_v58  ;;  %v1240_v4 = vadd.f32 %v1236_v61, %v1144_v42 }
 0xb02   :  { %v1243_v5 = vadd.f32 %v1239_v0, %v1147_v43 }
 0xb03   :  { %1773 = vmatprep.mubr.msk.bf16.mxu1 %vm214_vm0, %v1244_v3  ;;  %v1241_v6 = vadd.f32 %v1237_v2, %v1145_v44 }
 0xb04   :  { %1774 = vmatmul.mubr.msk.bf16.vlgmr.msra.gmra.mrb[28].mxu1 %vm214_vm0, %v1245_v1 }
 0xbd7   :  { %v1775_v10 = vpop.f32.mrb[28].mxu1 }
 0xbd8   :  { %v1320_v11 = vadd.f32 %v1775_v10, %v1580_v9  ;;  %v1311_v12 = vpop.f32.mrb[29].mxu1 }
 0xbd9   :  { %v1312_v13 = vadd.f32 %v1580_v9, %v1311_v12  ;;  %v1776_v14 = vpop.f32.mrb[30].mxu1 }
 0xbda   :  { %1916 = vtanh.f32 %v1320_v11  ;;  %v1323_v15 = vadd.f32 %v1776_v14, %v1580_v9  ;;  %v1314_v16 = vpop.f32.mrb[31].mxu1 }
 0xbdb   :  { %1918 = vtanh.f32 %v1312_v13  ;;  %v1315_v17 = vadd.f32 %v1580_v9, %v1314_v16 }
 0xbdc   :  { %1920 = vtanh.f32 %v1323_v15 }
 0xbdd   :  { %1922 = vtanh.f32 %v1315_v17 }
 0xbe4   :  { %v1917_v19 = vpop.eup %1916 }
 0xbe5   :  { %v1919_v20 = vpop.eup %1918  ;;  %v1334_v21 = vmul.f32 %v1917_v19, %v1331_v18 }
 0xbe6   :  { %v1921_v22 = vpop.eup %1920  ;;  %v1332_v23 = vmul.f32 %v1919_v20, %v1331_v18 }
 0xbe7   :  { %v1923_v24 = vpop.eup %1922  ;;  %v1335_v25 = vmul.f32 %v1921_v22, %v1331_v18  ;;  %v1338_v26 = vadd.f32 %v1334_v21, %v1242_v63 }
 0xbe8   :  { %v1333_v27 = vmul.f32 %v1923_v24, %v1331_v18  ;;  %v1336_v28 = vadd.f32 %v1332_v23, %v1240_v4 }
 0xbe9   :  { %v1339_v29 = vadd.f32 %v1335_v25, %v1243_v5 }
 0xbea   :  { %v1337_v30 = vadd.f32 %v1333_v27, %v1241_v6 }
 0xbeb   :  { %v1341_v31 = vpack.c.bf16 %v1339_v29, %v1338_v26 }
 0xbec   :  { %v1340_v32 = vpack.c.bf16 %v1337_v30, %v1336_v28 }
 0xbee   :  { %1781 = vmatprep.mubr.msk.bf16.mxu0 %vm214_vm0, %v1340_v32 }
 0xbef   :  { %1782 = vmatmul.mubr.msk.bf16.vlgmr.msra.gmra.mrb[20].mxu0 %vm214_vm0, %v1341_v31 }
 0xcc2   :  { %v1783_v34 = vpop.f32.mrb[20].mxu0 }
 0xcc3   :  { %v1414_v35 = vadd.f32 %v1783_v34, %v1586_v33  ;;  %v1405_v36 = vpop.f32.mrb[21].mxu0 }
 0xcc4   :  { %v1406_v37 = vadd.f32 %v1586_v33, %v1405_v36  ;;  %v1784_v38 = vpop.f32.mrb[22].mxu0 }
 0xcc5   :  { %v1422_v39 = vmax.f32 %v1414_v35, 0.0  ;;  %v1417_v40 = vadd.f32 %v1784_v38, %v1586_v33  ;;  %v1408_v41 = vpop.f32.mrb[23].mxu0 }
 0xcc6   :  { %v1420_v42 = vmax.f32 %v1406_v37, 0.0  ;;  %v1409_v43 = vadd.f32 %v1586_v33, %v1408_v41 }
 0xcc7   :  { %v1597_v44 = vpack.c.bf16 %v1422_v39, %v1422_v39  ;;  %v1423_v45 = vmax.f32 %v1417_v40, 0.0 }
 0xcc8   :  { %v1595_v46 = vpack.c.bf16 %v1420_v42, %v1420_v42  ;;  %v1421_v47 = vmax.f32 %v1409_v43, 0.0 }
 0xcc9   :  { %1443 = vst.msk [vmem:[%s2198_s9 + $0x8] sm:$0xf] %vm1440_vm1, %v1597_v44  ;;  %v1598_v48 = vpack.c.bf16 %v1423_v45, %v1423_v45 }
 0xcca   :  { %1441 = vst.msk [vmem:[%s2198_s9] sm:$0xf] %vm1440_vm1, %v1595_v46  ;;  %v1596_v49 = vpack.c.bf16 %v1421_v47, %v1421_v47 }
 0xccb   :  { %1444 = vst.msk [vmem:[%s2198_s9 + $0xc] sm:$0xf] %vm1440_vm1, %v1598_v48 }
 0xccc   :  { %1442 = vst.msk [vmem:[%s2198_s9 + $0x4] sm:$0xf] %vm1440_vm1, %v1596_v49 }
 0xccd   :  { %1449 = vsyncpa [#allocation4], 1 }

</bundles_post_ra>
